<compile_context>
chip_gen: v6e
topology: v6e:2x2x1
jax: 0.10.0
libtpu: 0.0.40
codegen_flags: <defaults>
</compile_context>

<pallas_src>
import math
import functools

import jax
import jax.numpy as jnp
from jax import lax
from jax.experimental import pallas as pl
from jax.experimental.pallas import tpu as pltpu


def encoder_layer_kernel(
    x_ref,            # (Bt, S, E)  activations (f32)
    wqkv_ref,         # (E, 3E)     fused, pre-transposed in-proj weight
    bqkv_ref,         # (1, 3E)     in-proj bias (f32)
    wo_ref,           # (E, E)      pre-transposed out-proj weight
    bo_ref,           # (1, E)
    w1_ref,           # (E, F)      pre-transposed linear1 weight
    b1_ref,           # (1, F)
    w2_ref,           # (F, E)      pre-transposed linear2 weight
    b2_ref,           # (1, E)
    n1w_ref, n1b_ref, # (1, E)      LayerNorm1 affine
    n2w_ref, n2b_ref, # (1, E)      LayerNorm2 affine
    o_ref,            # (Bt, S, E)
    attn_scratch,     # VMEM (Bt, S, E) f32
    *, nhead: int, eps: float = 1e-5,
):
    Bt, S, E = x_ref.shape
    Dh = E // nhead
    scale = 1.0 / math.sqrt(Dh)
    mdt = wqkv_ref.dtype          # MXU input dtype (f32 or bf16)

    x = x_ref[...].reshape(Bt * S, E)              # fold batch into the M dim

    # ---- fused Q,K,V projection: one (Bt*S, E) x (E, 3E) MXU matmul ----
    qkv = jnp.dot(x.astype(mdt), wqkv_ref[...],
                  preferred_element_type=jnp.float32) + bqkv_ref[...]
    qkv = qkv.reshape(Bt, S, 3 * E)

    # ---- multi-head scaled-dot-product attention ----
    # Heads are statically unrolled (nhead is small); each head is batched over
    # Bt with a single-batch-dim einsum and its context is written directly
    # into the VMEM scratch slice (no lane-dim concatenate).
    for h in range(nhead):
        q = qkv[:, :, h * Dh:(h + 1) * Dh] * scale                  # (Bt,S,Dh)
        k = qkv[:, :, E + h * Dh:E + (h + 1) * Dh]
        v = qkv[:, :, 2 * E + h * Dh:2 * E + (h + 1) * Dh]
        s = jnp.einsum('bqd,bkd->bqk', q.astype(mdt), k.astype(mdt),
                       preferred_element_type=jnp.float32)           # (Bt,S,S)
        m = jnp.max(s, axis=-1, keepdims=True)
        p = jnp.exp(s - m)
        p = p * pl.reciprocal(jnp.sum(p, axis=-1, keepdims=True), approx=True)
        ctx = jnp.einsum('bqk,bkd->bqd', p.astype(mdt), v.astype(mdt),
                         preferred_element_type=jnp.float32)         # (Bt,S,Dh)
        attn_scratch[:, :, h * Dh:(h + 1) * Dh] = ctx

    # ---- attention output projection ----
    attn = attn_scratch[...].reshape(Bt * S, E)
    attn = jnp.dot(attn.astype(mdt), wo_ref[...],
                   preferred_element_type=jnp.float32) + bo_ref[...]

    # ---- residual + LayerNorm1 (f32) ----
    y = x + attn
    mu = jnp.mean(y, axis=-1, keepdims=True)
    var = jnp.mean((y - mu) ** 2, axis=-1, keepdims=True)
    y = (y - mu) * lax.rsqrt(var + eps) * n1w_ref[...] + n1b_ref[...]

    # ---- feed-forward (relu) ----
    h1 = jnp.dot(y.astype(mdt), w1_ref[...],
                 preferred_element_type=jnp.float32) + b1_ref[...]
    h1 = jnp.maximum(h1, 0.0)
    y2 = jnp.dot(h1.astype(mdt), w2_ref[...],
                 preferred_element_type=jnp.float32) + b2_ref[...]

    # ---- residual + LayerNorm2 (f32) ----
    z = y + y2
    mu = jnp.mean(z, axis=-1, keepdims=True)
    var = jnp.mean((z - mu) ** 2, axis=-1, keepdims=True)
    z = (z - mu) * lax.rsqrt(var + eps) * n2w_ref[...] + n2b_ref[...]

    o_ref[...] = z.reshape(Bt, S, E).astype(o_ref.dtype)


def _pick_batch_block(N, S, target_rows=256):
    """Largest divisor of N such that Bt*S stays near target_rows (MXU M dim)."""
    cap = max(1, target_rows // max(S, 1))
    best = 1
    for d in range(1, N + 1):
        if N % d == 0 and d <= cap:
            best = d
    return best


def _prep_params(params, compute_dtype):
    """Fuse/pre-transpose weights ONCE on the host side; cast to compute dtype."""
    f32 = jnp.float32
    return dict(
        wqkv=params["in_w"].T.astype(compute_dtype),   # (E, 3E)
        bqkv=params["in_b"].astype(f32),               # (1, 3E)
        wo=params["out_w"].T.astype(compute_dtype),    # (E, E)
        bo=params["out_b"].astype(f32),
        w1=params["w1"].T.astype(compute_dtype),       # (E, F)
        b1=params["b1"].astype(f32),
        w2=params["w2"].T.astype(compute_dtype),       # (F, E)
        b2=params["b2"].astype(f32),
        n1w=params["n1w"].astype(f32), n1b=params["n1b"].astype(f32),
        n2w=params["n2w"].astype(f32), n2b=params["n2b"].astype(f32),
    )


def _build_call(N, S, E, F, Bt, nhead, single_buffer_weights):
    nb = N // Bt

    def const_spec(shape):
        idx = lambda n: (0,) * len(shape)
        if single_buffer_weights and hasattr(pl, "Buffered"):
            # Weights never change across grid steps -> single-buffer them so
            # they are not allocated twice in VMEM.
            return pl.BlockSpec(shape, idx, pipeline_mode=pl.Buffered(1))
        return pl.BlockSpec(shape, idx)

    in_specs = [
        pl.BlockSpec((Bt, S, E), lambda n: (n, 0, 0)),   # activations
        const_spec((E, 3 * E)), const_spec((1, 3 * E)),  # fused in-proj
        const_spec((E, E)), const_spec((1, E)),          # out-proj
        const_spec((E, F)), const_spec((1, F)),          # linear1
        const_spec((F, E)), const_spec((1, E)),          # linear2
        const_spec((1, E)), const_spec((1, E)),          # LN1
        const_spec((1, E)), const_spec((1, E)),          # LN2
    ]
    return pl.pallas_call(
        functools.partial(encoder_layer_kernel, nhead=nhead),
        out_shape=jax.ShapeDtypeStruct((N, S, E), jnp.float32),
        grid_spec=pltpu.PrefetchScalarGridSpec(
            num_scalar_prefetch=0,
            grid=(nb,),
            in_specs=in_specs,
            out_specs=pl.BlockSpec((Bt, S, E), lambda n: (n, 0, 0)),
            scratch_shapes=[pltpu.VMEM((Bt, S, E), jnp.float32)],
        ),
        compiler_params=pltpu.CompilerParams(
            dimension_semantics=("parallel",),
            vmem_limit_bytes=48 * 1024 * 1024,
        ),
    )


def transformer_encoder_layer(src, params, *, nhead, compute_dtype=jnp.float32):
    """src: (S, N, E) float32 -> (S, N, E) float32 (PyTorch seq-first layout)."""
    S, N, E = src.shape
    F = params["w1"].shape[0]
    assert E % nhead == 0

    p = _prep_params(params, compute_dtype)
    # NOTE: the (S,N,E)<->(N,S,E) transposes are two extra HBM passes over the
    # activations; supply batch-first data upstream to remove them entirely.
    x = jnp.transpose(src, (1, 0, 2)).astype(jnp.float32)

    Bt = _pick_batch_block(N, S)
    args = (x, p["wqkv"], p["bqkv"], p["wo"], p["bo"],
            p["w1"], p["b1"], p["w2"], p["b2"],
            p["n1w"], p["n1b"], p["n2w"], p["n2b"])

    try:
        out = _build_call(N, S, E, F, Bt, nhead, True)(*args)
    except Exception:
        # Fallback to default double-buffered weight specs if this Pallas
        # version rejects single-buffered (pl.Buffered(1)) BlockSpecs.
        out = _build_call(N, S, E, F, Bt, nhead, False)(*args)

    return jnp.transpose(out, (1, 0, 2))


def init_params(key, d_model, nhead, dim_feedforward):
    ks = jax.random.split(key, 6)
    s_in = 1.0 / math.sqrt(d_model)
    s_ff = 1.0 / math.sqrt(dim_feedforward)
    return {
        # MultiheadAttention
        "in_w":  jax.random.uniform(ks[0], (3 * d_model, d_model), jnp.float32, -s_in, s_in),
        "in_b":  jnp.zeros((1, 3 * d_model), jnp.float32),
        "out_w": jax.random.uniform(ks[1], (d_model, d_model), jnp.float32, -s_in, s_in),
        "out_b": jnp.zeros((1, d_model), jnp.float32),
        # FFN
        "w1": jax.random.uniform(ks[2], (dim_feedforward, d_model), jnp.float32, -s_in, s_in),
        "b1": jax.random.uniform(ks[3], (1, dim_feedforward), jnp.float32, -s_in, s_in),
        "w2": jax.random.uniform(ks[4], (d_model, dim_feedforward), jnp.float32, -s_ff, s_ff),
        "b2": jax.random.uniform(ks[5], (1, d_model), jnp.float32, -s_ff, s_ff),
        # LayerNorms (affine: weight=1, bias=0 like fresh nn.LayerNorm)
        "n1w": jnp.ones((1, d_model), jnp.float32),
        "n1b": jnp.zeros((1, d_model), jnp.float32),
        "n2w": jnp.ones((1, d_model), jnp.float32),
        "n2b": jnp.zeros((1, d_model), jnp.float32),
    }


def reference_encoder_layer(src, params, *, nhead, eps=1e-5):
    """Pure-JAX reference matching torch.nn.TransformerEncoderLayer.eval()."""
    S, N, E = src.shape
    Dh = E // nhead
    x = jnp.transpose(src, (1, 0, 2))                            # (N,S,E)
    qkv = x @ params["in_w"].T + params["in_b"][0]
    q, k, v = jnp.split(qkv, 3, axis=-1)
    q = q * (1.0 / math.sqrt(Dh))

    def split_heads(t):
        return t.reshape(N, S, nhead, Dh).transpose(0, 2, 1, 3)  # (N,H,S,Dh)

    q, k, v = split_heads(q), split_heads(k), split_heads(v)
    s = jnp.einsum('nhqd,nhkd->nhqk', q, k)
    p = jax.nn.softmax(s, axis=-1)
    ctx = jnp.einsum('nhqk,nhkd->nhqd', p, v)
    ctx = ctx.transpose(0, 2, 1, 3).reshape(N, S, E)
    attn = ctx @ params["out_w"].T + params["out_b"][0]

    def ln(t, w, b):
        mu = t.mean(-1, keepdims=True)
        var = ((t - mu) ** 2).mean(-1, keepdims=True)
        return (t - mu) / jnp.sqrt(var + eps) * w[0] + b[0]

    y = ln(x + attn, params["n1w"], params["n1b"])
    h = jnp.maximum(y @ params["w1"].T + params["b1"][0], 0.0)
    y2 = h @ params["w2"].T + params["b2"][0]
    z = ln(y + y2, params["n2w"], params["n2b"])
    return jnp.transpose(z, (1, 0, 2))


if __name__ == "__main__":
    d_model, nhead, dim_feedforward = 32, 4, 64
    S, N = 8, 2

    key = jax.random.PRNGKey(0)
    k_src, k_par = jax.random.split(key)
    src = jax.random.normal(k_src, (S, N, d_model), jnp.float32)
    params = init_params(k_par, d_model, nhead, dim_feedforward)

    # f32 path: exact PyTorch semantics.
    out = transformer_encoder_layer(src, params, nhead=nhead)
    out = jax.block_until_ready(out)
    assert out.shape == (S, N, d_model) and out.dtype == jnp.float32

    ref = reference_encoder_layer(src, params, nhead=nhead)
    assert bool(jnp.allclose(out, ref, atol=2e-2, rtol=2e-2)), \
        "kernel output mismatch vs pure-JAX reference"

    # bf16 MXU-input fast path (f32 accumulation); verify it runs and is finite.
    out_bf16 = transformer_encoder_layer(src, params, nhead=nhead,
                                         compute_dtype=jnp.bfloat16)
    out_bf16 = jax.block_until_ready(out_bf16)
    assert out_bf16.shape == (S, N, d_model)
    assert bool(jnp.all(jnp.isfinite(out_bf16)))

    print("KERNEL_OK")
</pallas_src>

<mosaic_0001>
module attributes {stable_mosaic.version = 11 : i64} {
  func.func @encoder_layer_kernel(%arg0: i32, %arg1: memref<2x8x32xf32, #tpu.memory_space<vmem>>, %arg2: memref<32x96xf32, #tpu.memory_space<vmem>>, %arg3: memref<1x96xf32, #tpu.memory_space<vmem>>, %arg4: memref<32x32xf32, #tpu.memory_space<vmem>>, %arg5: memref<1x32xf32, #tpu.memory_space<vmem>>, %arg6: memref<32x64xf32, #tpu.memory_space<vmem>>, %arg7: memref<1x64xf32, #tpu.memory_space<vmem>>, %arg8: memref<64x32xf32, #tpu.memory_space<vmem>>, %arg9: memref<1x32xf32, #tpu.memory_space<vmem>>, %arg10: memref<1x32xf32, #tpu.memory_space<vmem>>, %arg11: memref<1x32xf32, #tpu.memory_space<vmem>>, %arg12: memref<1x32xf32, #tpu.memory_space<vmem>>, %arg13: memref<1x32xf32, #tpu.memory_space<vmem>>, %arg14: memref<2x8x32xf32, #tpu.memory_space<vmem>>, %arg15: memref<2x8x32xf32, #tpu.memory_space<vmem>>) attributes {dimension_semantics = [#tpu.dimension_semantics<parallel>], iteration_bounds = array<i64: 1>, scalar_prefetch = 0 : i64, scratch_operands = 1 : i64, tpu.core_type = #tpu.core_type<tc>, window_params = [{transform_indices = @transform_0, window_bounds = array<i64: 2, 8, 32>}, {pipeline_mode = #tpu.pipeline_mode<synchronous>, transform_indices = @transform_1, window_bounds = array<i64: 32, 96>}, {pipeline_mode = #tpu.pipeline_mode<synchronous>, transform_indices = @transform_2, window_bounds = array<i64: 1, 96>}, {pipeline_mode = #tpu.pipeline_mode<synchronous>, transform_indices = @transform_3, window_bounds = array<i64: 32, 32>}, {pipeline_mode = #tpu.pipeline_mode<synchronous>, transform_indices = @transform_4, window_bounds = array<i64: 1, 32>}, {pipeline_mode = #tpu.pipeline_mode<synchronous>, transform_indices = @transform_5, window_bounds = array<i64: 32, 64>}, {pipeline_mode = #tpu.pipeline_mode<synchronous>, transform_indices = @transform_6, window_bounds = array<i64: 1, 64>}, {pipeline_mode = #tpu.pipeline_mode<synchronous>, transform_indices = @transform_7, window_bounds = array<i64: 64, 32>}, {pipeline_mode = #tpu.pipeline_mode<synchronous>, transform_indices = @transform_8, window_bounds = array<i64: 1, 32>}, {pipeline_mode = #tpu.pipeline_mode<synchronous>, transform_indices = @transform_9, window_bounds = array<i64: 1, 32>}, {pipeline_mode = #tpu.pipeline_mode<synchronous>, transform_indices = @transform_10, window_bounds = array<i64: 1, 32>}, {pipeline_mode = #tpu.pipeline_mode<synchronous>, transform_indices = @transform_11, window_bounds = array<i64: 1, 32>}, {pipeline_mode = #tpu.pipeline_mode<synchronous>, transform_indices = @transform_12, window_bounds = array<i64: 1, 32>}, {transform_indices = @transform_13, window_bounds = array<i64: 2, 8, 32>}]} {
    %c0 = arith.constant 0 : index
    %c0_0 = arith.constant 0 : index
    %c0_1 = arith.constant 0 : index
    %0 = vector.load %arg1[%c0, %c0_0, %c0_1] : memref<2x8x32xf32, #tpu.memory_space<vmem>>, vector<2x8x32xf32>
    %1 = vector.shape_cast %0 : vector<2x8x32xf32> to vector<16x32xf32>
    %c0_2 = arith.constant 0 : index
    %c0_3 = arith.constant 0 : index
    %2 = vector.load %arg2[%c0_2, %c0_3] : memref<32x96xf32, #tpu.memory_space<vmem>>, vector<32x96xf32>
    %cst = arith.constant dense<0.000000e+00> : vector<16x96xf32>
    %3 = tpu.matmul %1, %2, %cst {dimension_numbers = #tpu.dot_dimension_numbers<[1], [0], [0], [1], [0, 0, 1, 1], [], []>} : vector<16x32xf32>, vector<32x96xf32>, vector<16x96xf32> -> vector<16x96xf32>
    %c0_4 = arith.constant 0 : index
    %c0_5 = arith.constant 0 : index
    %4 = vector.load %arg3[%c0_4, %c0_5] : memref<1x96xf32, #tpu.memory_space<vmem>>, vector<1x96xf32>
    %5 = vector.broadcast %4 : vector<1x96xf32> to vector<16x96xf32>
    %6 = arith.addf %3, %5 : vector<16x96xf32>
    %7 = vector.shape_cast %6 : vector<16x96xf32> to vector<2x8x96xf32>
    %8 = vector.extract_strided_slice %7 {offsets = [0, 0, 0], sizes = [2, 8, 8], strides = [1, 1, 1]} : vector<2x8x96xf32> to vector<2x8x8xf32>
    %cst_6 = arith.constant 0.353553385 : f32
    %9 = vector.broadcast %cst_6 : f32 to vector<2x8x8xf32>
    %10 = arith.mulf %8, %9 : vector<2x8x8xf32>
    %11 = vector.extract_strided_slice %7 {offsets = [0, 0, 32], sizes = [2, 8, 8], strides = [1, 1, 1]} : vector<2x8x96xf32> to vector<2x8x8xf32>
    %12 = vector.extract_strided_slice %7 {offsets = [0, 0, 64], sizes = [2, 8, 8], strides = [1, 1, 1]} : vector<2x8x96xf32> to vector<2x8x8xf32>
    "tpu.trace_start"() <{level = 10 : i32, message = "bqd,bkd->bqk"}> : () -> ()
    %cst_7 = arith.constant dense<0.000000e+00> : vector<2x8x8xf32>
    %13 = tpu.matmul %10, %11, %cst_7 {dimension_numbers = #tpu.dot_dimension_numbers<[2], [2], [1], [1], [0, 0, 0, 1, 1, 1], [0], [0]>} : vector<2x8x8xf32>, vector<2x8x8xf32>, vector<2x8x8xf32> -> vector<2x8x8xf32>
    "tpu.trace_stop"() : () -> ()
    %cst_8 = arith.constant dense<0xFF800000> : vector<2x8xf32>
    %14 = vector.multi_reduction <maximumf>, %13, %cst_8 [2] : vector<2x8x8xf32> to vector<2x8xf32>
    %15 = vector.shape_cast %14 : vector<2x8xf32> to vector<2x8x1xf32>
    %16 = vector.broadcast %15 : vector<2x8x1xf32> to vector<2x8x8xf32>
    %17 = arith.subf %13, %16 : vector<2x8x8xf32>
    %18 = math.exp %17 : vector<2x8x8xf32>
    %cst_9 = arith.constant dense<0.000000e+00> : vector<2x8xf32>
    %19 = vector.multi_reduction <add>, %18, %cst_9 [2] : vector<2x8x8xf32> to vector<2x8xf32>
    %20 = vector.shape_cast %19 : vector<2x8xf32> to vector<2x8x1xf32>
    %21 = tpu.reciprocal %20 {approx = true} : vector<2x8x1xf32> -> vector<2x8x1xf32>
    %22 = vector.broadcast %21 : vector<2x8x1xf32> to vector<2x8x8xf32>
    %23 = arith.mulf %18, %22 : vector<2x8x8xf32>
    "tpu.trace_start"() <{level = 10 : i32, message = "bqk,bkd->bqd"}> : () -> ()
    %cst_10 = arith.constant dense<0.000000e+00> : vector<2x8x8xf32>
    %24 = tpu.matmul %23, %12, %cst_10 {dimension_numbers = #tpu.dot_dimension_numbers<[2], [1], [1], [2], [0, 0, 0, 1, 1, 2], [0], [0]>} : vector<2x8x8xf32>, vector<2x8x8xf32>, vector<2x8x8xf32> -> vector<2x8x8xf32>
    "tpu.trace_stop"() : () -> ()
    %c0_11 = arith.constant 0 : index
    %c0_12 = arith.constant 0 : index
    %c0_13 = arith.constant 0 : index
    %25 = vector.load %arg15[%c0_11, %c0_12, %c0_13] : memref<2x8x32xf32, #tpu.memory_space<vmem>>, vector<2x8x8xf32>
    tpu.vector_store %arg15[%c0_11, %c0_12, %c0_13], %24 {strides = array<i32>} : memref<2x8x32xf32, #tpu.memory_space<vmem>>, vector<2x8x8xf32>,
    %26 = vector.extract_strided_slice %7 {offsets = [0, 0, 8], sizes = [2, 8, 8], strides = [1, 1, 1]} : vector<2x8x96xf32> to vector<2x8x8xf32>
    %cst_14 = arith.constant 0.353553385 : f32
    %27 = vector.broadcast %cst_14 : f32 to vector<2x8x8xf32>
    %28 = arith.mulf %26, %27 : vector<2x8x8xf32>
    %29 = vector.extract_strided_slice %7 {offsets = [0, 0, 40], sizes = [2, 8, 8], strides = [1, 1, 1]} : vector<2x8x96xf32> to vector<2x8x8xf32>
    %30 = vector.extract_strided_slice %7 {offsets = [0, 0, 72], sizes = [2, 8, 8], strides = [1, 1, 1]} : vector<2x8x96xf32> to vector<2x8x8xf32>
    "tpu.trace_start"() <{level = 10 : i32, message = "bqd,bkd->bqk"}> : () -> ()
    %cst_15 = arith.constant dense<0.000000e+00> : vector<2x8x8xf32>
    %31 = tpu.matmul %28, %29, %cst_15 {dimension_numbers = #tpu.dot_dimension_numbers<[2], [2], [1], [1], [0, 0, 0, 1, 1, 1], [0], [0]>} : vector<2x8x8xf32>, vector<2x8x8xf32>, vector<2x8x8xf32> -> vector<2x8x8xf32>
    "tpu.trace_stop"() : () -> ()
    %cst_16 = arith.constant dense<0xFF800000> : vector<2x8xf32>
    %32 = vector.multi_reduction <maximumf>, %31, %cst_16 [2] : vector<2x8x8xf32> to vector<2x8xf32>
    %33 = vector.shape_cast %32 : vector<2x8xf32> to vector<2x8x1xf32>
    %34 = vector.broadcast %33 : vector<2x8x1xf32> to vector<2x8x8xf32>
    %35 = arith.subf %31, %34 : vector<2x8x8xf32>
    %36 = math.exp %35 : vector<2x8x8xf32>
    %cst_17 = arith.constant dense<0.000000e+00> : vector<2x8xf32>
    %37 = vector.multi_reduction <add>, %36, %cst_17 [2] : vector<2x8x8xf32> to vector<2x8xf32>
    %38 = vector.shape_cast %37 : vector<2x8xf32> to vector<2x8x1xf32>
    %39 = tpu.reciprocal %38 {approx = true} : vector<2x8x1xf32> -> vector<2x8x1xf32>
    %40 = vector.broadcast %39 : vector<2x8x1xf32> to vector<2x8x8xf32>
    %41 = arith.mulf %36, %40 : vector<2x8x8xf32>
    "tpu.trace_start"() <{level = 10 : i32, message = "bqk,bkd->bqd"}> : () -> ()
    %cst_18 = arith.constant dense<0.000000e+00> : vector<2x8x8xf32>
    %42 = tpu.matmul %41, %30, %cst_18 {dimension_numbers = #tpu.dot_dimension_numbers<[2], [1], [1], [2], [0, 0, 0, 1, 1, 2], [0], [0]>} : vector<2x8x8xf32>, vector<2x8x8xf32>, vector<2x8x8xf32> -> vector<2x8x8xf32>
    "tpu.trace_stop"() : () -> ()
    %c0_19 = arith.constant 0 : index
    %c0_20 = arith.constant 0 : index
    %c8 = arith.constant 8 : index
    %43 = vector.load %arg15[%c0_19, %c0_20, %c8] : memref<2x8x32xf32, #tpu.memory_space<vmem>>, vector<2x8x8xf32>
    tpu.vector_store %arg15[%c0_19, %c0_20, %c8], %42 {strides = array<i32>} : memref<2x8x32xf32, #tpu.memory_space<vmem>>, vector<2x8x8xf32>,
    %44 = vector.extract_strided_slice %7 {offsets = [0, 0, 16], sizes = [2, 8, 8], strides = [1, 1, 1]} : vector<2x8x96xf32> to vector<2x8x8xf32>
    %cst_21 = arith.constant 0.353553385 : f32
    %45 = vector.broadcast %cst_21 : f32 to vector<2x8x8xf32>
    %46 = arith.mulf %44, %45 : vector<2x8x8xf32>
    %47 = vector.extract_strided_slice %7 {offsets = [0, 0, 48], sizes = [2, 8, 8], strides = [1, 1, 1]} : vector<2x8x96xf32> to vector<2x8x8xf32>
    %48 = vector.extract_strided_slice %7 {offsets = [0, 0, 80], sizes = [2, 8, 8], strides = [1, 1, 1]} : vector<2x8x96xf32> to vector<2x8x8xf32>
    "tpu.trace_start"() <{level = 10 : i32, message = "bqd,bkd->bqk"}> : () -> ()
    %cst_22 = arith.constant dense<0.000000e+00> : vector<2x8x8xf32>
    %49 = tpu.matmul %46, %47, %cst_22 {dimension_numbers = #tpu.dot_dimension_numbers<[2], [2], [1], [1], [0, 0, 0, 1, 1, 1], [0], [0]>} : vector<2x8x8xf32>, vector<2x8x8xf32>, vector<2x8x8xf32> -> vector<2x8x8xf32>
    "tpu.trace_stop"() : () -> ()
    %cst_23 = arith.constant dense<0xFF800000> : vector<2x8xf32>
    %50 = vector.multi_reduction <maximumf>, %49, %cst_23 [2] : vector<2x8x8xf32> to vector<2x8xf32>
    %51 = vector.shape_cast %50 : vector<2x8xf32> to vector<2x8x1xf32>
    %52 = vector.broadcast %51 : vector<2x8x1xf32> to vector<2x8x8xf32>
    %53 = arith.subf %49, %52 : vector<2x8x8xf32>
    %54 = math.exp %53 : vector<2x8x8xf32>
    %cst_24 = arith.constant dense<0.000000e+00> : vector<2x8xf32>
    %55 = vector.multi_reduction <add>, %54, %cst_24 [2] : vector<2x8x8xf32> to vector<2x8xf32>
    %56 = vector.shape_cast %55 : vector<2x8xf32> to vector<2x8x1xf32>
    %57 = tpu.reciprocal %56 {approx = true} : vector<2x8x1xf32> -> vector<2x8x1xf32>
    %58 = vector.broadcast %57 : vector<2x8x1xf32> to vector<2x8x8xf32>
    %59 = arith.mulf %54, %58 : vector<2x8x8xf32>
    "tpu.trace_start"() <{level = 10 : i32, message = "bqk,bkd->bqd"}> : () -> ()
    %cst_25 = arith.constant dense<0.000000e+00> : vector<2x8x8xf32>
    %60 = tpu.matmul %59, %48, %cst_25 {dimension_numbers = #tpu.dot_dimension_numbers<[2], [1], [1], [2], [0, 0, 0, 1, 1, 2], [0], [0]>} : vector<2x8x8xf32>, vector<2x8x8xf32>, vector<2x8x8xf32> -> vector<2x8x8xf32>
    "tpu.trace_stop"() : () -> ()
    %c0_26 = arith.constant 0 : index
    %c0_27 = arith.constant 0 : index
    %c16 = arith.constant 16 : index
    %61 = vector.load %arg15[%c0_26, %c0_27, %c16] : memref<2x8x32xf32, #tpu.memory_space<vmem>>, vector<2x8x8xf32>
    tpu.vector_store %arg15[%c0_26, %c0_27, %c16], %60 {strides = array<i32>} : memref<2x8x32xf32, #tpu.memory_space<vmem>>, vector<2x8x8xf32>,
    %62 = vector.extract_strided_slice %7 {offsets = [0, 0, 24], sizes = [2, 8, 8], strides = [1, 1, 1]} : vector<2x8x96xf32> to vector<2x8x8xf32>
    %cst_28 = arith.constant 0.353553385 : f32
    %63 = vector.broadcast %cst_28 : f32 to vector<2x8x8xf32>
    %64 = arith.mulf %62, %63 : vector<2x8x8xf32>
    %65 = vector.extract_strided_slice %7 {offsets = [0, 0, 56], sizes = [2, 8, 8], strides = [1, 1, 1]} : vector<2x8x96xf32> to vector<2x8x8xf32>
    %66 = vector.extract_strided_slice %7 {offsets = [0, 0, 88], sizes = [2, 8, 8], strides = [1, 1, 1]} : vector<2x8x96xf32> to vector<2x8x8xf32>
    "tpu.trace_start"() <{level = 10 : i32, message = "bqd,bkd->bqk"}> : () -> ()
    %cst_29 = arith.constant dense<0.000000e+00> : vector<2x8x8xf32>
    %67 = tpu.matmul %64, %65, %cst_29 {dimension_numbers = #tpu.dot_dimension_numbers<[2], [2], [1], [1], [0, 0, 0, 1, 1, 1], [0], [0]>} : vector<2x8x8xf32>, vector<2x8x8xf32>, vector<2x8x8xf32> -> vector<2x8x8xf32>
    "tpu.trace_stop"() : () -> ()
    %cst_30 = arith.constant dense<0xFF800000> : vector<2x8xf32>
    %68 = vector.multi_reduction <maximumf>, %67, %cst_30 [2] : vector<2x8x8xf32> to vector<2x8xf32>
    %69 = vector.shape_cast %68 : vector<2x8xf32> to vector<2x8x1xf32>
    %70 = vector.broadcast %69 : vector<2x8x1xf32> to vector<2x8x8xf32>
    %71 = arith.subf %67, %70 : vector<2x8x8xf32>
    %72 = math.exp %71 : vector<2x8x8xf32>
    %cst_31 = arith.constant dense<0.000000e+00> : vector<2x8xf32>
    %73 = vector.multi_reduction <add>, %72, %cst_31 [2] : vector<2x8x8xf32> to vector<2x8xf32>
    %74 = vector.shape_cast %73 : vector<2x8xf32> to vector<2x8x1xf32>
    %75 = tpu.reciprocal %74 {approx = true} : vector<2x8x1xf32> -> vector<2x8x1xf32>
    %76 = vector.broadcast %75 : vector<2x8x1xf32> to vector<2x8x8xf32>
    %77 = arith.mulf %72, %76 : vector<2x8x8xf32>
    "tpu.trace_start"() <{level = 10 : i32, message = "bqk,bkd->bqd"}> : () -> ()
    %cst_32 = arith.constant dense<0.000000e+00> : vector<2x8x8xf32>
    %78 = tpu.matmul %77, %66, %cst_32 {dimension_numbers = #tpu.dot_dimension_numbers<[2], [1], [1], [2], [0, 0, 0, 1, 1, 2], [0], [0]>} : vector<2x8x8xf32>, vector<2x8x8xf32>, vector<2x8x8xf32> -> vector<2x8x8xf32>
    "tpu.trace_stop"() : () -> ()
    %c0_33 = arith.constant 0 : index
    %c0_34 = arith.constant 0 : index
    %c24 = arith.constant 24 : index
    %79 = vector.load %arg15[%c0_33, %c0_34, %c24] : memref<2x8x32xf32, #tpu.memory_space<vmem>>, vector<2x8x8xf32>
    tpu.vector_store %arg15[%c0_33, %c0_34, %c24], %78 {strides = array<i32>} : memref<2x8x32xf32, #tpu.memory_space<vmem>>, vector<2x8x8xf32>,
    %c0_35 = arith.constant 0 : index
    %c0_36 = arith.constant 0 : index
    %c0_37 = arith.constant 0 : index
    %80 = vector.load %arg15[%c0_35, %c0_36, %c0_37] : memref<2x8x32xf32, #tpu.memory_space<vmem>>, vector<2x8x32xf32>
    %81 = vector.shape_cast %80 : vector<2x8x32xf32> to vector<16x32xf32>
    %c0_38 = arith.constant 0 : index
    %c0_39 = arith.constant 0 : index
    %82 = vector.load %arg4[%c0_38, %c0_39] : memref<32x32xf32, #tpu.memory_space<vmem>>, vector<32x32xf32>
    %cst_40 = arith.constant dense<0.000000e+00> : vector<16x32xf32>
    %83 = tpu.matmul %81, %82, %cst_40 {dimension_numbers = #tpu.dot_dimension_numbers<[1], [0], [0], [1], [0, 0, 1, 1], [], []>} : vector<16x32xf32>, vector<32x32xf32>, vector<16x32xf32> -> vector<16x32xf32>
    %c0_41 = arith.constant 0 : index
    %c0_42 = arith.constant 0 : index
    %84 = vector.load %arg5[%c0_41, %c0_42] : memref<1x32xf32, #tpu.memory_space<vmem>>, vector<1x32xf32>
    %85 = vector.broadcast %84 : vector<1x32xf32> to vector<16x32xf32>
    %86 = arith.addf %83, %85 : vector<16x32xf32>
    %87 = arith.addf %1, %86 : vector<16x32xf32>
    %cst_43 = arith.constant dense<0.000000e+00> : vector<16xf32>
    %88 = vector.multi_reduction <add>, %87, %cst_43 [1] : vector<16x32xf32> to vector<16xf32>
    %89 = vector.shape_cast %88 : vector<16xf32> to vector<16x1xf32>
    %cst_44 = arith.constant 3.200000e+01 : f32
    %90 = vector.broadcast %cst_44 : f32 to vector<16x1xf32>
    %91 = arith.divf %89, %90 : vector<16x1xf32>
    %92 = vector.broadcast %91 : vector<16x1xf32> to vector<16x32xf32>
    %93 = arith.subf %87, %92 : vector<16x32xf32>
    %94 = arith.mulf %93, %93 : vector<16x32xf32>
    %cst_45 = arith.constant dense<0.000000e+00> : vector<16xf32>
    %95 = vector.multi_reduction <add>, %94, %cst_45 [1] : vector<16x32xf32> to vector<16xf32>
    %96 = vector.shape_cast %95 : vector<16xf32> to vector<16x1xf32>
    %cst_46 = arith.constant 3.200000e+01 : f32
    %97 = vector.broadcast %cst_46 : f32 to vector<16x1xf32>
    %98 = arith.divf %96, %97 : vector<16x1xf32>
    %99 = vector.broadcast %91 : vector<16x1xf32> to vector<16x32xf32>
    %100 = arith.subf %87, %99 : vector<16x32xf32>
    %cst_47 = arith.constant 9.99999974E-6 : f32
    %101 = vector.broadcast %cst_47 : f32 to vector<16x1xf32>
    %102 = arith.addf %98, %101 : vector<16x1xf32>
    %103 = math.rsqrt %102 : vector<16x1xf32>
    %104 = vector.broadcast %103 : vector<16x1xf32> to vector<16x32xf32>
    %105 = arith.mulf %100, %104 : vector<16x32xf32>
    %c0_48 = arith.constant 0 : index
    %c0_49 = arith.constant 0 : index
    %106 = vector.load %arg10[%c0_48, %c0_49] : memref<1x32xf32, #tpu.memory_space<vmem>>, vector<1x32xf32>
    %107 = vector.broadcast %106 : vector<1x32xf32> to vector<16x32xf32>
    %108 = arith.mulf %105, %107 : vector<16x32xf32>
    %c0_50 = arith.constant 0 : index
    %c0_51 = arith.constant 0 : index
    %109 = vector.load %arg11[%c0_50, %c0_51] : memref<1x32xf32, #tpu.memory_space<vmem>>, vector<1x32xf32>
    %110 = vector.broadcast %109 : vector<1x32xf32> to vector<16x32xf32>
    %111 = arith.addf %108, %110 : vector<16x32xf32>
    %c0_52 = arith.constant 0 : index
    %c0_53 = arith.constant 0 : index
    %112 = vector.load %arg6[%c0_52, %c0_53] : memref<32x64xf32, #tpu.memory_space<vmem>>, vector<32x64xf32>
    %cst_54 = arith.constant dense<0.000000e+00> : vector<16x64xf32>
    %113 = tpu.matmul %111, %112, %cst_54 {dimension_numbers = #tpu.dot_dimension_numbers<[1], [0], [0], [1], [0, 0, 1, 1], [], []>} : vector<16x32xf32>, vector<32x64xf32>, vector<16x64xf32> -> vector<16x64xf32>
    %c0_55 = arith.constant 0 : index
    %c0_56 = arith.constant 0 : index
    %114 = vector.load %arg7[%c0_55, %c0_56] : memref<1x64xf32, #tpu.memory_space<vmem>>, vector<1x64xf32>
    %115 = vector.broadcast %114 : vector<1x64xf32> to vector<16x64xf32>
    %116 = arith.addf %113, %115 : vector<16x64xf32>
    %cst_57 = arith.constant 0.000000e+00 : f32
    %117 = vector.broadcast %cst_57 : f32 to vector<16x64xf32>
    %118 = arith.maximumf %116, %117 : vector<16x64xf32>
    %c0_58 = arith.constant 0 : index
    %c0_59 = arith.constant 0 : index
    %119 = vector.load %arg8[%c0_58, %c0_59] : memref<64x32xf32, #tpu.memory_space<vmem>>, vector<64x32xf32>
    %cst_60 = arith.constant dense<0.000000e+00> : vector<16x32xf32>
    %120 = tpu.matmul %118, %119, %cst_60 {dimension_numbers = #tpu.dot_dimension_numbers<[1], [0], [0], [1], [0, 0, 1, 1], [], []>} : vector<16x64xf32>, vector<64x32xf32>, vector<16x32xf32> -> vector<16x32xf32>
    %c0_61 = arith.constant 0 : index
    %c0_62 = arith.constant 0 : index
    %121 = vector.load %arg9[%c0_61, %c0_62] : memref<1x32xf32, #tpu.memory_space<vmem>>, vector<1x32xf32>
    %122 = vector.broadcast %121 : vector<1x32xf32> to vector<16x32xf32>
    %123 = arith.addf %120, %122 : vector<16x32xf32>
    %124 = arith.addf %111, %123 : vector<16x32xf32>
    %cst_63 = arith.constant dense<0.000000e+00> : vector<16xf32>
    %125 = vector.multi_reduction <add>, %124, %cst_63 [1] : vector<16x32xf32> to vector<16xf32>
    %126 = vector.shape_cast %125 : vector<16xf32> to vector<16x1xf32>
    %cst_64 = arith.constant 3.200000e+01 : f32
    %127 = vector.broadcast %cst_64 : f32 to vector<16x1xf32>
    %128 = arith.divf %126, %127 : vector<16x1xf32>
    %129 = vector.broadcast %128 : vector<16x1xf32> to vector<16x32xf32>
    %130 = arith.subf %124, %129 : vector<16x32xf32>
    %131 = arith.mulf %130, %130 : vector<16x32xf32>
    %cst_65 = arith.constant dense<0.000000e+00> : vector<16xf32>
    %132 = vector.multi_reduction <add>, %131, %cst_65 [1] : vector<16x32xf32> to vector<16xf32>
    %133 = vector.shape_cast %132 : vector<16xf32> to vector<16x1xf32>
    %cst_66 = arith.constant 3.200000e+01 : f32
    %134 = vector.broadcast %cst_66 : f32 to vector<16x1xf32>
    %135 = arith.divf %133, %134 : vector<16x1xf32>
    %136 = vector.broadcast %128 : vector<16x1xf32> to vector<16x32xf32>
    %137 = arith.subf %124, %136 : vector<16x32xf32>
    %cst_67 = arith.constant 9.99999974E-6 : f32
    %138 = vector.broadcast %cst_67 : f32 to vector<16x1xf32>
    %139 = arith.addf %135, %138 : vector<16x1xf32>
    %140 = math.rsqrt %139 : vector<16x1xf32>
    %141 = vector.broadcast %140 : vector<16x1xf32> to vector<16x32xf32>
    %142 = arith.mulf %137, %141 : vector<16x32xf32>
    %c0_68 = arith.constant 0 : index
    %c0_69 = arith.constant 0 : index
    %143 = vector.load %arg12[%c0_68, %c0_69] : memref<1x32xf32, #tpu.memory_space<vmem>>, vector<1x32xf32>
    %144 = vector.broadcast %143 : vector<1x32xf32> to vector<16x32xf32>
    %145 = arith.mulf %142, %144 : vector<16x32xf32>
    %c0_70 = arith.constant 0 : index
    %c0_71 = arith.constant 0 : index
    %146 = vector.load %arg13[%c0_70, %c0_71] : memref<1x32xf32, #tpu.memory_space<vmem>>, vector<1x32xf32>
    %147 = vector.broadcast %146 : vector<1x32xf32> to vector<16x32xf32>
    %148 = arith.addf %145, %147 : vector<16x32xf32>
    %149 = vector.shape_cast %148 : vector<16x32xf32> to vector<2x8x32xf32>
    %c0_72 = arith.constant 0 : index
    %c0_73 = arith.constant 0 : index
    %c0_74 = arith.constant 0 : index
    %150 = vector.load %arg14[%c0_72, %c0_73, %c0_74] : memref<2x8x32xf32, #tpu.memory_space<vmem>>, vector<2x8x32xf32>
    tpu.vector_store %arg14[%c0_72, %c0_73, %c0_74], %149 {strides = array<i32>} : memref<2x8x32xf32, #tpu.memory_space<vmem>>, vector<2x8x32xf32>,
    return
  }
  func.func @transform_0(%arg0: i32) -> (i32, i32, i32) {
    %c0_i32 = arith.constant 0 : i32
    %c0_i32_0 = arith.constant 0 : i32
    %c0_i32_1 = arith.constant 0 : i32
    return %arg0, %c0_i32, %c0_i32_0 : i32, i32, i32
  }
  func.func @transform_1(%arg0: i32) -> (i32, i32) {
    %c0_i32 = arith.constant 0 : i32
    %c0_i32_0 = arith.constant 0 : i32
    %c0_i32_1 = arith.constant 0 : i32
    return %c0_i32, %c0_i32_0 : i32, i32
  }
  func.func @transform_2(%arg0: i32) -> (i32, i32) {
    %c0_i32 = arith.constant 0 : i32
    %c0_i32_0 = arith.constant 0 : i32
    %c0_i32_1 = arith.constant 0 : i32
    return %c0_i32, %c0_i32_0 : i32, i32
  }
  func.func @transform_3(%arg0: i32) -> (i32, i32) {
    %c0_i32 = arith.constant 0 : i32
    %c0_i32_0 = arith.constant 0 : i32
    %c0_i32_1 = arith.constant 0 : i32
    return %c0_i32, %c0_i32_0 : i32, i32
  }
  func.func @transform_4(%arg0: i32) -> (i32, i32) {
    %c0_i32 = arith.constant 0 : i32
    %c0_i32_0 = arith.constant 0 : i32
    %c0_i32_1 = arith.constant 0 : i32
    return %c0_i32, %c0_i32_0 : i32, i32
  }
  func.func @transform_5(%arg0: i32) -> (i32, i32) {
    %c0_i32 = arith.constant 0 : i32
    %c0_i32_0 = arith.constant 0 : i32
    %c0_i32_1 = arith.constant 0 : i32
    return %c0_i32, %c0_i32_0 : i32, i32
  }
  func.func @transform_6(%arg0: i32) -> (i32, i32) {
    %c0_i32 = arith.constant 0 : i32
    %c0_i32_0 = arith.constant 0 : i32
    %c0_i32_1 = arith.constant 0 : i32
    return %c0_i32, %c0_i32_0 : i32, i32
  }
  func.func @transform_7(%arg0: i32) -> (i32, i32) {
    %c0_i32 = arith.constant 0 : i32
    %c0_i32_0 = arith.constant 0 : i32
    %c0_i32_1 = arith.constant 0 : i32
    return %c0_i32, %c0_i32_0 : i32, i32
  }
  func.func @transform_8(%arg0: i32) -> (i32, i32) {
    %c0_i32 = arith.constant 0 : i32
    %c0_i32_0 = arith.constant 0 : i32
    %c0_i32_1 = arith.constant 0 : i32
    return %c0_i32, %c0_i32_0 : i32, i32
  }
  func.func @transform_9(%arg0: i32) -> (i32, i32) {
    %c0_i32 = arith.constant 0 : i32
    %c0_i32_0 = arith.constant 0 : i32
    %c0_i32_1 = arith.constant 0 : i32
    return %c0_i32, %c0_i32_0 : i32, i32
  }
  func.func @transform_10(%arg0: i32) -> (i32, i32) {
    %c0_i32 = arith.constant 0 : i32
    %c0_i32_0 = arith.constant 0 : i32
    %c0_i32_1 = arith.constant 0 : i32
    return %c0_i32, %c0_i32_0 : i32, i32
  }
  func.func @transform_11(%arg0: i32) -> (i32, i32) {
    %c0_i32 = arith.constant 0 : i32
    %c0_i32_0 = arith.constant 0 : i32
    %c0_i32_1 = arith.constant 0 : i32
    return %c0_i32, %c0_i32_0 : i32, i32
  }
  func.func @transform_12(%arg0: i32) -> (i32, i32) {
    %c0_i32 = arith.constant 0 : i32
    %c0_i32_0 = arith.constant 0 : i32
    %c0_i32_1 = arith.constant 0 : i32
    return %c0_i32, %c0_i32_0 : i32, i32
  }
  func.func @transform_13(%arg0: i32) -> (i32, i32, i32) {
    %c0_i32 = arith.constant 0 : i32
    %c0_i32_0 = arith.constant 0 : i32
    %c0_i32_1 = arith.constant 0 : i32
    return %arg0, %c0_i32, %c0_i32_0 : i32, i32, i32
  }
}

module attributes {stable_mosaic.version = 11 : i64} {
  func.func @encoder_layer_kernel(%arg0: i32, %arg1: memref<2x8x32xf32, #tpu.memory_space<vmem>>, %arg2: memref<32x96xf32, #tpu.memory_space<vmem>>, %arg3: memref<1x96xf32, #tpu.memory_space<vmem>>, %arg4: memref<32x32xf32, #tpu.memory_space<vmem>>, %arg5: memref<1x32xf32, #tpu.memory_space<vmem>>, %arg6: memref<32x64xf32, #tpu.memory_space<vmem>>, %arg7: memref<1x64xf32, #tpu.memory_space<vmem>>, %arg8: memref<64x32xf32, #tpu.memory_space<vmem>>, %arg9: memref<1x32xf32, #tpu.memory_space<vmem>>, %arg10: memref<1x32xf32, #tpu.memory_space<vmem>>, %arg11: memref<1x32xf32, #tpu.memory_space<vmem>>, %arg12: memref<1x32xf32, #tpu.memory_space<vmem>>, %arg13: memref<1x32xf32, #tpu.memory_space<vmem>>, %arg14: memref<2x8x32xf32, #tpu.memory_space<vmem>>, %arg15: memref<2x8x32xf32, #tpu.memory_space<vmem>>) attributes {dimension_semantics = [#tpu.dimension_semantics<parallel>], iteration_bounds = array<i64: 1>, scalar_prefetch = 0 : i64, scratch_operands = 1 : i64, tpu.core_type = #tpu.core_type<tc>, window_params = [{transform_indices = @transform_0, window_bounds = array<i64: 2, 8, 32>}, {pipeline_mode = #tpu.pipeline_mode<synchronous>, transform_indices = @transform_1, window_bounds = array<i64: 32, 96>}, {pipeline_mode = #tpu.pipeline_mode<synchronous>, transform_indices = @transform_2, window_bounds = array<i64: 1, 96>}, {pipeline_mode = #tpu.pipeline_mode<synchronous>, transform_indices = @transform_3, window_bounds = array<i64: 32, 32>}, {pipeline_mode = #tpu.pipeline_mode<synchronous>, transform_indices = @transform_4, window_bounds = array<i64: 1, 32>}, {pipeline_mode = #tpu.pipeline_mode<synchronous>, transform_indices = @transform_5, window_bounds = array<i64: 32, 64>}, {pipeline_mode = #tpu.pipeline_mode<synchronous>, transform_indices = @transform_6, window_bounds = array<i64: 1, 64>}, {pipeline_mode = #tpu.pipeline_mode<synchronous>, transform_indices = @transform_7, window_bounds = array<i64: 64, 32>}, {pipeline_mode = #tpu.pipeline_mode<synchronous>, transform_indices = @transform_8, window_bounds = array<i64: 1, 32>}, {pipeline_mode = #tpu.pipeline_mode<synchronous>, transform_indices = @transform_9, window_bounds = array<i64: 1, 32>}, {pipeline_mode = #tpu.pipeline_mode<synchronous>, transform_indices = @transform_10, window_bounds = array<i64: 1, 32>}, {pipeline_mode = #tpu.pipeline_mode<synchronous>, transform_indices = @transform_11, window_bounds = array<i64: 1, 32>}, {pipeline_mode = #tpu.pipeline_mode<synchronous>, transform_indices = @transform_12, window_bounds = array<i64: 1, 32>}, {transform_indices = @transform_13, window_bounds = array<i64: 2, 8, 32>}]} {
    %c0 = arith.constant 0 : index
    %c0_0 = arith.constant 0 : index
    %c0_1 = arith.constant 0 : index
    %0 = vector.load %arg1[%c0, %c0_0, %c0_1] : memref<2x8x32xf32, #tpu.memory_space<vmem>>, vector<2x8x32xf32>
    %1 = vector.shape_cast %0 : vector<2x8x32xf32> to vector<16x32xf32>
    %c0_2 = arith.constant 0 : index
    %c0_3 = arith.constant 0 : index
    %2 = vector.load %arg2[%c0_2, %c0_3] : memref<32x96xf32, #tpu.memory_space<vmem>>, vector<32x96xf32>
    %cst = arith.constant dense<0.000000e+00> : vector<16x96xf32>
    %3 = tpu.matmul %1, %2, %cst {dimension_numbers = #tpu.dot_dimension_numbers<[1], [0], [0], [1], [0, 0, 1, 1], [], []>} : vector<16x32xf32>, vector<32x96xf32>, vector<16x96xf32> -> vector<16x96xf32>
    %c0_4 = arith.constant 0 : index
    %c0_5 = arith.constant 0 : index
    %4 = vector.load %arg3[%c0_4, %c0_5] : memref<1x96xf32, #tpu.memory_space<vmem>>, vector<1x96xf32>
    %5 = vector.broadcast %4 : vector<1x96xf32> to vector<16x96xf32>
    %6 = arith.addf %3, %5 : vector<16x96xf32>
    %7 = vector.shape_cast %6 : vector<16x96xf32> to vector<2x8x96xf32>
    %8 = vector.extract_strided_slice %7 {offsets = [0, 0, 0], sizes = [2, 8, 8], strides = [1, 1, 1]} : vector<2x8x96xf32> to vector<2x8x8xf32>
    %cst_6 = arith.constant 0.353553385 : f32
    %9 = vector.broadcast %cst_6 : f32 to vector<2x8x8xf32>
    %10 = arith.mulf %8, %9 : vector<2x8x8xf32>
    %11 = vector.extract_strided_slice %7 {offsets = [0, 0, 32], sizes = [2, 8, 8], strides = [1, 1, 1]} : vector<2x8x96xf32> to vector<2x8x8xf32>
    %12 = vector.extract_strided_slice %7 {offsets = [0, 0, 64], sizes = [2, 8, 8], strides = [1, 1, 1]} : vector<2x8x96xf32> to vector<2x8x8xf32>
    "tpu.trace_start"() <{level = 10 : i32, message = "bqd,bkd->bqk"}> : () -> ()
    %cst_7 = arith.constant dense<0.000000e+00> : vector<2x8x8xf32>
    %13 = tpu.matmul %10, %11, %cst_7 {dimension_numbers = #tpu.dot_dimension_numbers<[2], [2], [1], [1], [0, 0, 0, 1, 1, 1], [0], [0]>} : vector<2x8x8xf32>, vector<2x8x8xf32>, vector<2x8x8xf32> -> vector<2x8x8xf32>
    "tpu.trace_stop"() : () -> ()
    %cst_8 = arith.constant dense<0xFF800000> : vector<2x8xf32>
    %14 = vector.multi_reduction <maximumf>, %13, %cst_8 [2] : vector<2x8x8xf32> to vector<2x8xf32>
    %15 = vector.shape_cast %14 : vector<2x8xf32> to vector<2x8x1xf32>
    %16 = vector.broadcast %15 : vector<2x8x1xf32> to vector<2x8x8xf32>
    %17 = arith.subf %13, %16 : vector<2x8x8xf32>
    %18 = math.exp %17 : vector<2x8x8xf32>
    %cst_9 = arith.constant dense<0.000000e+00> : vector<2x8xf32>
    %19 = vector.multi_reduction <add>, %18, %cst_9 [2] : vector<2x8x8xf32> to vector<2x8xf32>
    %20 = vector.shape_cast %19 : vector<2x8xf32> to vector<2x8x1xf32>
    %21 = tpu.reciprocal %20 {approx = true} : vector<2x8x1xf32> -> vector<2x8x1xf32>
    %22 = vector.broadcast %21 : vector<2x8x1xf32> to vector<2x8x8xf32>
    %23 = arith.mulf %18, %22 : vector<2x8x8xf32>
    "tpu.trace_start"() <{level = 10 : i32, message = "bqk,bkd->bqd"}> : () -> ()
    %cst_10 = arith.constant dense<0.000000e+00> : vector<2x8x8xf32>
    %24 = tpu.matmul %23, %12, %cst_10 {dimension_numbers = #tpu.dot_dimension_numbers<[2], [1], [1], [2], [0, 0, 0, 1, 1, 2], [0], [0]>} : vector<2x8x8xf32>, vector<2x8x8xf32>, vector<2x8x8xf32> -> vector<2x8x8xf32>
    "tpu.trace_stop"() : () -> ()
    %c0_11 = arith.constant 0 : index
    %c0_12 = arith.constant 0 : index
    %c0_13 = arith.constant 0 : index
    %25 = vector.load %arg15[%c0_11, %c0_12, %c0_13] : memref<2x8x32xf32, #tpu.memory_space<vmem>>, vector<2x8x8xf32>
    tpu.vector_store %arg15[%c0_11, %c0_12, %c0_13], %24 {strides = array<i32>} : memref<2x8x32xf32, #tpu.memory_space<vmem>>, vector<2x8x8xf32>,
    %26 = vector.extract_strided_slice %7 {offsets = [0, 0, 8], sizes = [2, 8, 8], strides = [1, 1, 1]} : vector<2x8x96xf32> to vector<2x8x8xf32>
    %cst_14 = arith.constant 0.353553385 : f32
    %27 = vector.broadcast %cst_14 : f32 to vector<2x8x8xf32>
    %28 = arith.mulf %26, %27 : vector<2x8x8xf32>
    %29 = vector.extract_strided_slice %7 {offsets = [0, 0, 40], sizes = [2, 8, 8], strides = [1, 1, 1]} : vector<2x8x96xf32> to vector<2x8x8xf32>
    %30 = vector.extract_strided_slice %7 {offsets = [0, 0, 72], sizes = [2, 8, 8], strides = [1, 1, 1]} : vector<2x8x96xf32> to vector<2x8x8xf32>
    "tpu.trace_start"() <{level = 10 : i32, message = "bqd,bkd->bqk"}> : () -> ()
    %cst_15 = arith.constant dense<0.000000e+00> : vector<2x8x8xf32>
    %31 = tpu.matmul %28, %29, %cst_15 {dimension_numbers = #tpu.dot_dimension_numbers<[2], [2], [1], [1], [0, 0, 0, 1, 1, 1], [0], [0]>} : vector<2x8x8xf32>, vector<2x8x8xf32>, vector<2x8x8xf32> -> vector<2x8x8xf32>
    "tpu.trace_stop"() : () -> ()
    %cst_16 = arith.constant dense<0xFF800000> : vector<2x8xf32>
    %32 = vector.multi_reduction <maximumf>, %31, %cst_16 [2] : vector<2x8x8xf32> to vector<2x8xf32>
    %33 = vector.shape_cast %32 : vector<2x8xf32> to vector<2x8x1xf32>
    %34 = vector.broadcast %33 : vector<2x8x1xf32> to vector<2x8x8xf32>
    %35 = arith.subf %31, %34 : vector<2x8x8xf32>
    %36 = math.exp %35 : vector<2x8x8xf32>
    %cst_17 = arith.constant dense<0.000000e+00> : vector<2x8xf32>
    %37 = vector.multi_reduction <add>, %36, %cst_17 [2] : vector<2x8x8xf32> to vector<2x8xf32>
    %38 = vector.shape_cast %37 : vector<2x8xf32> to vector<2x8x1xf32>
    %39 = tpu.reciprocal %38 {approx = true} : vector<2x8x1xf32> -> vector<2x8x1xf32>
    %40 = vector.broadcast %39 : vector<2x8x1xf32> to vector<2x8x8xf32>
    %41 = arith.mulf %36, %40 : vector<2x8x8xf32>
    "tpu.trace_start"() <{level = 10 : i32, message = "bqk,bkd->bqd"}> : () -> ()
    %cst_18 = arith.constant dense<0.000000e+00> : vector<2x8x8xf32>
    %42 = tpu.matmul %41, %30, %cst_18 {dimension_numbers = #tpu.dot_dimension_numbers<[2], [1], [1], [2], [0, 0, 0, 1, 1, 2], [0], [0]>} : vector<2x8x8xf32>, vector<2x8x8xf32>, vector<2x8x8xf32> -> vector<2x8x8xf32>
    "tpu.trace_stop"() : () -> ()
    %c0_19 = arith.constant 0 : index
    %c0_20 = arith.constant 0 : index
    %c8 = arith.constant 8 : index
    %43 = vector.load %arg15[%c0_19, %c0_20, %c8] : memref<2x8x32xf32, #tpu.memory_space<vmem>>, vector<2x8x8xf32>
    tpu.vector_store %arg15[%c0_19, %c0_20, %c8], %42 {strides = array<i32>} : memref<2x8x32xf32, #tpu.memory_space<vmem>>, vector<2x8x8xf32>,
    %44 = vector.extract_strided_slice %7 {offsets = [0, 0, 16], sizes = [2, 8, 8], strides = [1, 1, 1]} : vector<2x8x96xf32> to vector<2x8x8xf32>
    %cst_21 = arith.constant 0.353553385 : f32
    %45 = vector.broadcast %cst_21 : f32 to vector<2x8x8xf32>
    %46 = arith.mulf %44, %45 : vector<2x8x8xf32>
    %47 = vector.extract_strided_slice %7 {offsets = [0, 0, 48], sizes = [2, 8, 8], strides = [1, 1, 1]} : vector<2x8x96xf32> to vector<2x8x8xf32>
    %48 = vector.extract_strided_slice %7 {offsets = [0, 0, 80], sizes = [2, 8, 8], strides = [1, 1, 1]} : vector<2x8x96xf32> to vector<2x8x8xf32>
    "tpu.trace_start"() <{level = 10 : i32, message = "bqd,bkd->bqk"}> : () -> ()
    %cst_22 = arith.constant dense<0.000000e+00> : vector<2x8x8xf32>
    %49 = tpu.matmul %46, %47, %cst_22 {dimension_numbers = #tpu.dot_dimension_numbers<[2], [2], [1], [1], [0, 0, 0, 1, 1, 1], [0], [0]>} : vector<2x8x8xf32>, vector<2x8x8xf32>, vector<2x8x8xf32> -> vector<2x8x8xf32>
    "tpu.trace_stop"() : () -> ()
    %cst_23 = arith.constant dense<0xFF800000> : vector<2x8xf32>
    %50 = vector.multi_reduction <maximumf>, %49, %cst_23 [2] : vector<2x8x8xf32> to vector<2x8xf32>
    %51 = vector.shape_cast %50 : vector<2x8xf32> to vector<2x8x1xf32>
    %52 = vector.broadcast %51 : vector<2x8x1xf32> to vector<2x8x8xf32>
    %53 = arith.subf %49, %52 : vector<2x8x8xf32>
    %54 = math.exp %53 : vector<2x8x8xf32>
    %cst_24 = arith.constant dense<0.000000e+00> : vector<2x8xf32>
    %55 = vector.multi_reduction <add>, %54, %cst_24 [2] : vector<2x8x8xf32> to vector<2x8xf32>
    %56 = vector.shape_cast %55 : vector<2x8xf32> to vector<2x8x1xf32>
    %57 = tpu.reciprocal %56 {approx = true} : vector<2x8x1xf32> -> vector<2x8x1xf32>
    %58 = vector.broadcast %57 : vector<2x8x1xf32> to vector<2x8x8xf32>
    %59 = arith.mulf %54, %58 : vector<2x8x8xf32>
    "tpu.trace_start"() <{level = 10 : i32, message = "bqk,bkd->bqd"}> : () -> ()
    %cst_25 = arith.constant dense<0.000000e+00> : vector<2x8x8xf32>
    %60 = tpu.matmul %59, %48, %cst_25 {dimension_numbers = #tpu.dot_dimension_numbers<[2], [1], [1], [2], [0, 0, 0, 1, 1, 2], [0], [0]>} : vector<2x8x8xf32>, vector<2x8x8xf32>, vector<2x8x8xf32> -> vector<2x8x8xf32>
    "tpu.trace_stop"() : () -> ()
    %c0_26 = arith.constant 0 : index
    %c0_27 = arith.constant 0 : index
    %c16 = arith.constant 16 : index
    %61 = vector.load %arg15[%c0_26, %c0_27, %c16] : memref<2x8x32xf32, #tpu.memory_space<vmem>>, vector<2x8x8xf32>
    tpu.vector_store %arg15[%c0_26, %c0_27, %c16], %60 {strides = array<i32>} : memref<2x8x32xf32, #tpu.memory_space<vmem>>, vector<2x8x8xf32>,
    %62 = vector.extract_strided_slice %7 {offsets = [0, 0, 24], sizes = [2, 8, 8], strides = [1, 1, 1]} : vector<2x8x96xf32> to vector<2x8x8xf32>
    %cst_28 = arith.constant 0.353553385 : f32
    %63 = vector.broadcast %cst_28 : f32 to vector<2x8x8xf32>
    %64 = arith.mulf %62, %63 : vector<2x8x8xf32>
    %65 = vector.extract_strided_slice %7 {offsets = [0, 0, 56], sizes = [2, 8, 8], strides = [1, 1, 1]} : vector<2x8x96xf32> to vector<2x8x8xf32>
    %66 = vector.extract_strided_slice %7 {offsets = [0, 0, 88], sizes = [2, 8, 8], strides = [1, 1, 1]} : vector<2x8x96xf32> to vector<2x8x8xf32>
    "tpu.trace_start"() <{level = 10 : i32, message = "bqd,bkd->bqk"}> : () -> ()
    %cst_29 = arith.constant dense<0.000000e+00> : vector<2x8x8xf32>
    %67 = tpu.matmul %64, %65, %cst_29 {dimension_numbers = #tpu.dot_dimension_numbers<[2], [2], [1], [1], [0, 0, 0, 1, 1, 1], [0], [0]>} : vector<2x8x8xf32>, vector<2x8x8xf32>, vector<2x8x8xf32> -> vector<2x8x8xf32>
    "tpu.trace_stop"() : () -> ()
    %cst_30 = arith.constant dense<0xFF800000> : vector<2x8xf32>
    %68 = vector.multi_reduction <maximumf>, %67, %cst_30 [2] : vector<2x8x8xf32> to vector<2x8xf32>
    %69 = vector.shape_cast %68 : vector<2x8xf32> to vector<2x8x1xf32>
    %70 = vector.broadcast %69 : vector<2x8x1xf32> to vector<2x8x8xf32>
    %71 = arith.subf %67, %70 : vector<2x8x8xf32>
    %72 = math.exp %71 : vector<2x8x8xf32>
    %cst_31 = arith.constant dense<0.000000e+00> : vector<2x8xf32>
    %73 = vector.multi_reduction <add>, %72, %cst_31 [2] : vector<2x8x8xf32> to vector<2x8xf32>
    %74 = vector.shape_cast %73 : vector<2x8xf32> to vector<2x8x1xf32>
    %75 = tpu.reciprocal %74 {approx = true} : vector<2x8x1xf32> -> vector<2x8x1xf32>
    %76 = vector.broadcast %75 : vector<2x8x1xf32> to vector<2x8x8xf32>
    %77 = arith.mulf %72, %76 : vector<2x8x8xf32>
    "tpu.trace_start"() <{level = 10 : i32, message = "bqk,bkd->bqd"}> : () -> ()
    %cst_32 = arith.constant dense<0.000000e+00> : vector<2x8x8xf32>
    %78 = tpu.matmul %77, %66, %cst_32 {dimension_numbers = #tpu.dot_dimension_numbers<[2], [1], [1], [2], [0, 0, 0, 1, 1, 2], [0], [0]>} : vector<2x8x8xf32>, vector<2x8x8xf32>, vector<2x8x8xf32> -> vector<2x8x8xf32>
    "tpu.trace_stop"() : () -> ()
    %c0_33 = arith.constant 0 : index
    %c0_34 = arith.constant 0 : index
    %c24 = arith.constant 24 : index
    %79 = vector.load %arg15[%c0_33, %c0_34, %c24] : memref<2x8x32xf32, #tpu.memory_space<vmem>>, vector<2x8x8xf32>
    tpu.vector_store %arg15[%c0_33, %c0_34, %c24], %78 {strides = array<i32>} : memref<2x8x32xf32, #tpu.memory_space<vmem>>, vector<2x8x8xf32>,
    %c0_35 = arith.constant 0 : index
    %c0_36 = arith.constant 0 : index
    %c0_37 = arith.constant 0 : index
    %80 = vector.load %arg15[%c0_35, %c0_36, %c0_37] : memref<2x8x32xf32, #tpu.memory_space<vmem>>, vector<2x8x32xf32>
    %81 = vector.shape_cast %80 : vector<2x8x32xf32> to vector<16x32xf32>
    %c0_38 = arith.constant 0 : index
    %c0_39 = arith.constant 0 : index
    %82 = vector.load %arg4[%c0_38, %c0_39] : memref<32x32xf32, #tpu.memory_space<vmem>>, vector<32x32xf32>
    %cst_40 = arith.constant dense<0.000000e+00> : vector<16x32xf32>
    %83 = tpu.matmul %81, %82, %cst_40 {dimension_numbers = #tpu.dot_dimension_numbers<[1], [0], [0], [1], [0, 0, 1, 1], [], []>} : vector<16x32xf32>, vector<32x32xf32>, vector<16x32xf32> -> vector<16x32xf32>
    %c0_41 = arith.constant 0 : index
    %c0_42 = arith.constant 0 : index
    %84 = vector.load %arg5[%c0_41, %c0_42] : memref<1x32xf32, #tpu.memory_space<vmem>>, vector<1x32xf32>
    %85 = vector.broadcast %84 : vector<1x32xf32> to vector<16x32xf32>
    %86 = arith.addf %83, %85 : vector<16x32xf32>
    %87 = arith.addf %1, %86 : vector<16x32xf32>
    %cst_43 = arith.constant dense<0.000000e+00> : vector<16xf32>
    %88 = vector.multi_reduction <add>, %87, %cst_43 [1] : vector<16x32xf32> to vector<16xf32>
    %89 = vector.shape_cast %88 : vector<16xf32> to vector<16x1xf32>
    %cst_44 = arith.constant 3.200000e+01 : f32
    %90 = vector.broadcast %cst_44 : f32 to vector<16x1xf32>
    %91 = arith.divf %89, %90 : vector<16x1xf32>
    %92 = vector.broadcast %91 : vector<16x1xf32> to vector<16x32xf32>
    %93 = arith.subf %87, %92 : vector<16x32xf32>
    %94 = arith.mulf %93, %93 : vector<16x32xf32>
    %cst_45 = arith.constant dense<0.000000e+00> : vector<16xf32>
    %95 = vector.multi_reduction <add>, %94, %cst_45 [1] : vector<16x32xf32> to vector<16xf32>
    %96 = vector.shape_cast %95 : vector<16xf32> to vector<16x1xf32>
    %cst_46 = arith.constant 3.200000e+01 : f32
    %97 = vector.broadcast %cst_46 : f32 to vector<16x1xf32>
    %98 = arith.divf %96, %97 : vector<16x1xf32>
    %99 = vector.broadcast %91 : vector<16x1xf32> to vector<16x32xf32>
    %100 = arith.subf %87, %99 : vector<16x32xf32>
    %cst_47 = arith.constant 9.99999974E-6 : f32
    %101 = vector.broadcast %cst_47 : f32 to vector<16x1xf32>
    %102 = arith.addf %98, %101 : vector<16x1xf32>
    %103 = math.rsqrt %102 : vector<16x1xf32>
    %104 = vector.broadcast %103 : vector<16x1xf32> to vector<16x32xf32>
    %105 = arith.mulf %100, %104 : vector<16x32xf32>
    %c0_48 = arith.constant 0 : index
    %c0_49 = arith.constant 0 : index
    %106 = vector.load %arg10[%c0_48, %c0_49] : memref<1x32xf32, #tpu.memory_space<vmem>>, vector<1x32xf32>
    %107 = vector.broadcast %106 : vector<1x32xf32> to vector<16x32xf32>
    %108 = arith.mulf %105, %107 : vector<16x32xf32>
    %c0_50 = arith.constant 0 : index
    %c0_51 = arith.constant 0 : index
    %109 = vector.load %arg11[%c0_50, %c0_51] : memref<1x32xf32, #tpu.memory_space<vmem>>, vector<1x32xf32>
    %110 = vector.broadcast %109 : vector<1x32xf32> to vector<16x32xf32>
    %111 = arith.addf %108, %110 : vector<16x32xf32>
    %c0_52 = arith.constant 0 : index
    %c0_53 = arith.constant 0 : index
    %112 = vector.load %arg6[%c0_52, %c0_53] : memref<32x64xf32, #tpu.memory_space<vmem>>, vector<32x64xf32>
    %cst_54 = arith.constant dense<0.000000e+00> : vector<16x64xf32>
    %113 = tpu.matmul %111, %112, %cst_54 {dimension_numbers = #tpu.dot_dimension_numbers<[1], [0], [0], [1], [0, 0, 1, 1], [], []>} : vector<16x32xf32>, vector<32x64xf32>, vector<16x64xf32> -> vector<16x64xf32>
    %c0_55 = arith.constant 0 : index
    %c0_56 = arith.constant 0 : index
    %114 = vector.load %arg7[%c0_55, %c0_56] : memref<1x64xf32, #tpu.memory_space<vmem>>, vector<1x64xf32>
    %115 = vector.broadcast %114 : vector<1x64xf32> to vector<16x64xf32>
    %116 = arith.addf %113, %115 : vector<16x64xf32>
    %cst_57 = arith.constant 0.000000e+00 : f32
    %117 = vector.broadcast %cst_57 : f32 to vector<16x64xf32>
    %118 = arith.maximumf %116, %117 : vector<16x64xf32>
    %c0_58 = arith.constant 0 : index
    %c0_59 = arith.constant 0 : index
    %119 = vector.load %arg8[%c0_58, %c0_59] : memref<64x32xf32, #tpu.memory_space<vmem>>, vector<64x32xf32>
    %cst_60 = arith.constant dense<0.000000e+00> : vector<16x32xf32>
    %120 = tpu.matmul %118, %119, %cst_60 {dimension_numbers = #tpu.dot_dimension_numbers<[1], [0], [0], [1], [0, 0, 1, 1], [], []>} : vector<16x64xf32>, vector<64x32xf32>, vector<16x32xf32> -> vector<16x32xf32>
    %c0_61 = arith.constant 0 : index
    %c0_62 = arith.constant 0 : index
    %121 = vector.load %arg9[%c0_61, %c0_62] : memref<1x32xf32, #tpu.memory_space<vmem>>, vector<1x32xf32>
    %122 = vector.broadcast %121 : vector<1x32xf32> to vector<16x32xf32>
    %123 = arith.addf %120, %122 : vector<16x32xf32>
    %124 = arith.addf %111, %123 : vector<16x32xf32>
    %cst_63 = arith.constant dense<0.000000e+00> : vector<16xf32>
    %125 = vector.multi_reduction <add>, %124, %cst_63 [1] : vector<16x32xf32> to vector<16xf32>
    %126 = vector.shape_cast %125 : vector<16xf32> to vector<16x1xf32>
    %cst_64 = arith.constant 3.200000e+01 : f32
    %127 = vector.broadcast %cst_64 : f32 to vector<16x1xf32>
    %128 = arith.divf %126, %127 : vector<16x1xf32>
    %129 = vector.broadcast %128 : vector<16x1xf32> to vector<16x32xf32>
    %130 = arith.subf %124, %129 : vector<16x32xf32>
    %131 = arith.mulf %130, %130 : vector<16x32xf32>
    %cst_65 = arith.constant dense<0.000000e+00> : vector<16xf32>
    %132 = vector.multi_reduction <add>, %131, %cst_65 [1] : vector<16x32xf32> to vector<16xf32>
    %133 = vector.shape_cast %132 : vector<16xf32> to vector<16x1xf32>
    %cst_66 = arith.constant 3.200000e+01 : f32
    %134 = vector.broadcast %cst_66 : f32 to vector<16x1xf32>
    %135 = arith.divf %133, %134 : vector<16x1xf32>
    %136 = vector.broadcast %128 : vector<16x1xf32> to vector<16x32xf32>
    %137 = arith.subf %124, %136 : vector<16x32xf32>
    %cst_67 = arith.constant 9.99999974E-6 : f32
    %138 = vector.broadcast %cst_67 : f32 to vector<16x1xf32>
    %139 = arith.addf %135, %138 : vector<16x1xf32>
    %140 = math.rsqrt %139 : vector<16x1xf32>
    %141 = vector.broadcast %140 : vector<16x1xf32> to vector<16x32xf32>
    %142 = arith.mulf %137, %141 : vector<16x32xf32>
    %c0_68 = arith.constant 0 : index
    %c0_69 = arith.constant 0 : index
    %143 = vector.load %arg12[%c0_68, %c0_69] : memref<1x32xf32, #tpu.memory_space<vmem>>, vector<1x32xf32>
    %144 = vector.broadcast %143 : vector<1x32xf32> to vector<16x32xf32>
    %145 = arith.mulf %142, %144 : vector<16x32xf32>
    %c0_70 = arith.constant 0 : index
    %c0_71 = arith.constant 0 : index
    %146 = vector.load %arg13[%c0_70, %c0_71] : memref<1x32xf32, #tpu.memory_space<vmem>>, vector<1x32xf32>
    %147 = vector.broadcast %146 : vector<1x32xf32> to vector<16x32xf32>
    %148 = arith.addf %145, %147 : vector<16x32xf32>
    %149 = vector.shape_cast %148 : vector<16x32xf32> to vector<2x8x32xf32>
    %c0_72 = arith.constant 0 : index
    %c0_73 = arith.constant 0 : index
    %c0_74 = arith.constant 0 : index
    %150 = vector.load %arg14[%c0_72, %c0_73, %c0_74] : memref<2x8x32xf32, #tpu.memory_space<vmem>>, vector<2x8x32xf32>
    tpu.vector_store %arg14[%c0_72, %c0_73, %c0_74], %149 {strides = array<i32>} : memref<2x8x32xf32, #tpu.memory_space<vmem>>, vector<2x8x32xf32>,
    return
  }
  func.func @transform_0(%arg0: i32) -> (i32, i32, i32) {
    %c0_i32 = arith.constant 0 : i32
    %c0_i32_0 = arith.constant 0 : i32
    %c0_i32_1 = arith.constant 0 : i32
    return %arg0, %c0_i32, %c0_i32_0 : i32, i32, i32
  }
  func.func @transform_1(%arg0: i32) -> (i32, i32) {
    %c0_i32 = arith.constant 0 : i32
    %c0_i32_0 = arith.constant 0 : i32
    %c0_i32_1 = arith.constant 0 : i32
    return %c0_i32, %c0_i32_0 : i32, i32
  }
  func.func @transform_2(%arg0: i32) -> (i32, i32) {
    %c0_i32 = arith.constant 0 : i32
    %c0_i32_0 = arith.constant 0 : i32
    %c0_i32_1 = arith.constant 0 : i32
    return %c0_i32, %c0_i32_0 : i32, i32
  }
  func.func @transform_3(%arg0: i32) -> (i32, i32) {
    %c0_i32 = arith.constant 0 : i32
    %c0_i32_0 = arith.constant 0 : i32
    %c0_i32_1 = arith.constant 0 : i32
    return %c0_i32, %c0_i32_0 : i32, i32
  }
  func.func @transform_4(%arg0: i32) -> (i32, i32) {
    %c0_i32 = arith.constant 0 : i32
    %c0_i32_0 = arith.constant 0 : i32
    %c0_i32_1 = arith.constant 0 : i32
    return %c0_i32, %c0_i32_0 : i32, i32
  }
  func.func @transform_5(%arg0: i32) -> (i32, i32) {
    %c0_i32 = arith.constant 0 : i32
    %c0_i32_0 = arith.constant 0 : i32
    %c0_i32_1 = arith.constant 0 : i32
    return %c0_i32, %c0_i32_0 : i32, i32
  }
  func.func @transform_6(%arg0: i32) -> (i32, i32) {
    %c0_i32 = arith.constant 0 : i32
    %c0_i32_0 = arith.constant 0 : i32
    %c0_i32_1 = arith.constant 0 : i32
    return %c0_i32, %c0_i32_0 : i32, i32
  }
  func.func @transform_7(%arg0: i32) -> (i32, i32) {
    %c0_i32 = arith.constant 0 : i32
    %c0_i32_0 = arith.constant 0 : i32
    %c0_i32_1 = arith.constant 0 : i32
    return %c0_i32, %c0_i32_0 : i32, i32
  }
  func.func @transform_8(%arg0: i32) -> (i32, i32) {
    %c0_i32 = arith.constant 0 : i32
    %c0_i32_0 = arith.constant 0 : i32
    %c0_i32_1 = arith.constant 0 : i32
    return %c0_i32, %c0_i32_0 : i32, i32
  }
  func.func @transform_9(%arg0: i32) -> (i32, i32) {
    %c0_i32 = arith.constant 0 : i32
    %c0_i32_0 = arith.constant 0 : i32
    %c0_i32_1 = arith.constant 0 : i32
    return %c0_i32, %c0_i32_0 : i32, i32
  }
  func.func @transform_10(%arg0: i32) -> (i32, i32) {
    %c0_i32 = arith.constant 0 : i32
    %c0_i32_0 = arith.constant 0 : i32
    %c0_i32_1 = arith.constant 0 : i32
    return %c0_i32, %c0_i32_0 : i32, i32
  }
  func.func @transform_11(%arg0: i32) -> (i32, i32) {
    %c0_i32 = arith.constant 0 : i32
    %c0_i32_0 = arith.constant 0 : i32
    %c0_i32_1 = arith.constant 0 : i32
    return %c0_i32, %c0_i32_0 : i32, i32
  }
  func.func @transform_12(%arg0: i32) -> (i32, i32) {
    %c0_i32 = arith.constant 0 : i32
    %c0_i32_0 = arith.constant 0 : i32
    %c0_i32_1 = arith.constant 0 : i32
    return %c0_i32, %c0_i32_0 : i32, i32
  }
  func.func @transform_13(%arg0: i32) -> (i32, i32, i32) {
    %c0_i32 = arith.constant 0 : i32
    %c0_i32_0 = arith.constant 0 : i32
    %c0_i32_1 = arith.constant 0 : i32
    return %arg0, %c0_i32, %c0_i32_0 : i32, i32, i32
  }
}

</mosaic_0001>

<bundles_post_ra>
// kernel: tpu_custom_call.1
= control target key start
LH: loop header
LB: loop body
LE: loop exit
PB: predicated region body
PF: predicated region fallthrough
CT: control target
= control target key end

     0   :  { %18 = vsyncpa [#allocation4], 0  ;;  %s2587_s0 = inlined_call_operand.hbm [shape: f32[2,8,32], index: 0, kind: input, shape index: {}]   ;;  %s2588_s1 = inlined_call_operand.vmem [shape: f32[32,96], index: 1, kind: input, shape index: {}]   ;;  %s2589_s2 = inlined_call_operand.vmem [shape: f32[1,96], index: 2, kind: input, shape index: {}]   ;;  %s2590_s3 = inlined_call_operand.vmem [shape: f32[32,32], index: 3, kind: input, shape index: {}]   ;;  %s2591_s4 = inlined_call_operand.vmem [shape: f32[1,32], index: 4, kind: input, shape index: {}]   ;;  %s2592_s5 = inlined_call_operand.vmem [shape: f32[32,64], index: 5, kind: input, shape index: {}]   ;;  %s2593_s6 = inlined_call_operand.vmem [shape: f32[1,64], index: 6, kind: input, shape index: {}]   ;;  %s2594_s7 = inlined_call_operand.vmem [shape: f32[64,32], index: 7, kind: input, shape index: {}]   ;;  %s2595_s8 = inlined_call_operand.vmem [shape: f32[1,32], index: 8, kind: input, shape index: {}]   ;;  %s2596_s9 = inlined_call_operand.vmem [shape: f32[1,32], index: 9, kind: input, shape index: {}]   ;;  %s2597_s10 = inlined_call_operand.vmem [shape: f32[1,32], index: 10, kind: input, shape index: {}]   ;;  %s2598_s11 = inlined_call_operand.vmem [shape: f32[1,32], index: 11, kind: input, shape index: {}]   ;;  %s2599_s12 = inlined_call_operand.vmem [shape: f32[1,32], index: 12, kind: input, shape index: {}]   ;;  %s2600_s13 = inlined_call_operand.hbm [shape: f32[2,8,32], index: 13, kind: output, shape index: {}]  }
   0x1   :  { %19 = vsyncpa [#allocation5], 0  ;;  %s2244_s25 = smov [#allocation3]  }
   0x2   :  { %s25_s26 = sshll.u32 %s2244_s25, 4  ;;  %s26_s26 = int_to_ptr.vmem [resolvable:$true] %s25_s26 }
   0x3   :  { %s2208_s27 = scalar_lea.vmem %s26_s26, 256  ;;  %p2213_p1 = scmp.lt.s32.totalorder %s26_s26, %s26_s26 }
   0x4   :  { %p2209_p0 = scmp.ne.s32.totalorder %s26_s26, %s2208_s27  ;;  %p2214_p2 = scmp.lt.s32.totalorder %s2208_s27, %s2208_s27 }
   0x6   :  { %p2215_p3 = por %p2214_p2, %p2213_p1 }
   0x8   :  { %p2216_p4 = pnand %p2215_p3, %p2209_p0 }
   0xa   :  { %2219 = shalt.err (!%p2216_p4)
}
   0xb   :  { %s2245_s28 = smov 128   ;;  %s2246_s29 = smov 8  }
   0xc   :  { %31 = dma.hbm_to_vmem [thread:$0]  %s2587_s0, 256, %s26_s26, [#allocation4], %s2245_s28, %s2245_s28, %s2246_s29  }
   0xd   :  { %2240 = dma.done.wait [#allocation4], 256  }
   0xe   :  { %2241 = vsyncadd [#allocation4], 4294967040  ;;  %vm72_vm0 = vcmask 261120   ;;  %v64_v0 = vld [vmem:[%s2588_s1 + $0x18] sm:$0xff]  ;;  %v63_v1 = vld [vmem:[%s2588_s1 + $0x10] sm:$0xff]  ;;  %v2247_v6 = vmov 0.0  }
   0xf   :  { %2009 = vmatprep.subr.mxu1 %v64_v0  ;;  %v2345_v2 = vld [vmem:[#allocation3] sm:$0xff]  ;;  %v62_v3 = vld [vmem:[%s2588_s1 + $0x8] sm:$0xff]  ;;  %v61_v4 = vld [vmem:[%s2588_s1] sm:$0xff]  ;;  %2030 = vmatprep.subr.mxu0 %v2247_v6  ;;  %vm2248_vm1 = vmmov 0   ;;  %s2249_s23 = smov 96   ;;  %vm159_vm2 = vcmask 64512  }
  0x10   :  { %2010 = vmatpush3.msra.mxu1 %v64_v0  ;;  %2017 = vmatprep.mubr.msk.f32.mxu1 %vm72_vm0, %v2345_v2  ;;  %v2355_v5 = vld [vmem:[#allocation3 + $0x8] sm:$0xff]  ;;  %v1909_v8 = vld [vmem:[%s2589_s2] ss:$0 sm:$0xff]  ;;  %s2250_s2 = smov 64   ;;  %s2251_s24 = smov 88   ;;  %vm827_vm3 = vcmask 130112  }
  0x11   :  { %2011 = vmatprep.subr.mxu1 %v63_v1  ;;  %2032 = vmatprep.mubr.msk.f32.mxu0 %vm2248_vm1, %v2247_v6  ;;  %s2252_s25 = smov 120   ;;  %s2253_s26 = smov 56   ;;  %vm1168_vm4 = vcmask 195712   ;;  %vm1509_vm5 = vcmask 261312   ;;  %vm1762_vm6 = vcmask 523264  }
  0x12   :  { %2012 = vmatpush3.msra.mxu1 %v63_v1  ;;  %s2254_s27 = smov 80   ;;  %s2255_s30 = smov 112  }
  0x13   :  { %2013 = vmatprep.subr.mxu1 %v62_v3  ;;  %s2256_s14 = smov 48   ;;  %s2257_s15 = smov 72  }
  0x14   :  { %2014 = vmatpush3.msra.mxu1 %v62_v3  ;;  %s2258_s16 = smov 104   ;;  %s2259_s17 = smov 40  }
  0x15   :  { %2015 = vmatprep.subr.mxu1 %v61_v4  ;;  %s2260_s18 = smov 16   ;;  %s2262_s20 = smov [#allocation6]  }
  0x16   :  { %2016 = vmatpush3.msra.mxu1 %v61_v4  ;;  %s1897_s0 = sshll.u32 %s2262_s20, 4  ;;  %s1898_s0 = int_to_ptr.vmem [resolvable:$true] %s1897_s0 }
  0x17   :  { %2018 = vmatmul.mubr.msk.f32.vlgmr.msra.gmra.mxu1 %vm72_vm0, %v2355_v5  ;;  %2020 = vmatprep.subr.mxu1 %v2247_v6  ;;  %s2220_s21 = scalar_lea.vmem %s1898_s0, 256  ;;  %p2225_p6 = scmp.lt.s32.totalorder %s1898_s0, %s1898_s0 }
  0x18   :  { %2022 = vmatprep.mubr.msk.f32.mxu1 %vm2248_vm1, %v2247_v6  ;;  %p2221_p5 = scmp.ne.s32.totalorder %s1898_s0, %s2220_s21  ;;  %p2226_p7 = scmp.lt.s32.totalorder %s2220_s21, %s2220_s21 }
  0x1a   :  { %p2227_p8 = por %p2226_p7, %p2225_p6 }
  0x1c   :  { %p2228_p9 = pnand %p2227_p8, %p2221_p5 }
  0xd7   :  { %v2019_v7 = vpop.f32.mrf.mxu1 }
  0xd8   :  { %v2371_v11 = vadd.f32 %v2019_v7, %v1909_v8 }
  0xd9   :  { %v145_v9 = vpop.f32.mrf.mxu1 }
  0xda   :  { %v2368_v10 = vadd.f32 %v1909_v8, %v145_v9  ;;  %v2385_v15 = vmul.f32 0.35355338, %v2371_v11 }
  0xdc   :  { %157 = vrot.lane.b32.xlu0 %v2368_v10, %s2249_s23  ;;  %v2377_v13 = vmul.f32 0.35355338, %v2368_v10 }
  0xe0   :  { %236 = vrot.lane.b32.xlu0 %v2371_v11, %s2249_s23 }
 0x14e   :  { %v158_v12 = vpop.permute.xlu0 %157 }
 0x14f   :  { %2021 = vmatpush3.xpose.msk.msra.mxu1 %vm159_vm2, %v158_v12 }
 0x150   :  { %2025 = vmatprep.subr.mxu1 %v2247_v6 }
 0x152   :  { %v237_v14 = vpop.permute.xlu0 %236  ;;  %2023 = vmatmul.mubr.msk.f32.vlgmr.msra.gmra.mxu1 %vm159_vm2, %v2377_v13 }
 0x153   :  { %2026 = vmatpush3.xpose.msk.msra.mxu1 %vm159_vm2, %v237_v14  ;;  %2027 = vmatprep.mubr.msk.f32.mxu1 %vm2248_vm1, %v2247_v6 }
 0x154   :  { %2035 = vmatprep.subr.mxu1 %v2247_v6 }
 0x156   :  { %2028 = vmatmul.mubr.msk.f32.vlgmr.msra.gmra.mxu1 %vm159_vm2, %v2385_v15 }
 0x157   :  { %2037 = vmatprep.mubr.msk.f32.mxu1 %vm2248_vm1, %v2247_v6 }
 0x212   :  { %v231_v16 = vpop.f32.mrf.mxu1 }
 0x213   :  { %v313_v17 = vsel %vm159_vm2, %v231_v16, -inf }
 0x214   :  { %314 = vmax.xlane.f32.xlu1 %v313_v17  ;;  %v2024_v18 = vpop.f32.mrf.mxu1 }
 0x216   :  { %v309_v19 = vpop.f32.mrf.mxu1 }
 0x217   :  { %v316_v20 = vsel %vm159_vm2, %v309_v19, -inf }
 0x218   :  { %317 = vmax.xlane.f32.xlu1 %v316_v20  ;;  %v2029_v21 = vpop.f32.mrf.mxu1 }
 0x229   :  { %335 = vrot.lane.b32.xlu1 %v2368_v10, %s2250_s2 }
 0x22d   :  { %411 = vrot.lane.b32.xlu1 %v2371_v11, %s2250_s2 }
 0x231   :  { %491 = vrot.lane.b32.xlu1 %v2368_v10, %s2251_s24 }
 0x235   :  { %569 = vrot.lane.b32.xlu1 %v2371_v11, %s2251_s24  ;;  %s2261_s24 = smov 24  }
 0x29d   :  { %v315_v22 = vpop.xlane.xlu1 %314 }
 0x29e   :  { %v319_v23 = vsub.f32 %v231_v16, %v315_v22 }
 0x2a0   :  { %v321_v24 = vmul.f32 1.442695, %v319_v23 }
 0x2a1   :  { %v318_v25 = vpop.xlane.xlu1 %317 }
 0x2a2   :  { %2160 = vpow2.f32 %v321_v24  ;;  %v320_v26 = vsub.f32 %v309_v19, %v318_v25 }
 0x2a4   :  { %v323_v27 = vmul.f32 1.442695, %v320_v26 }
 0x2a5   :  { %v336_v28 = vpop.permute.xlu1 %335 }
 0x2a6   :  { %2162 = vpow2.f32 %v323_v27  ;;  %2031 = vmatpush3.msra.mxu0 %v336_v28 }
 0x2a7   :  { %2040 = vmatprep.subr.mxu0 %v2247_v6 }
 0x2a9   :  { %v412_v29 = vpop.permute.xlu1 %411 }
 0x2aa   :  { %2036 = vmatpush3.msra.mxu1 %v412_v29 }
 0x2ab   :  { %2045 = vmatprep.subr.mxu1 %v2247_v6 }
 0x2ad   :  { %v492_v34 = vpop.permute.xlu1 %491 }
 0x2af   :  { %v2161_v30 = vpop.eup %2160 }
 0x2b0   :  { %v325_v31 = vsel %vm159_vm2, %v2161_v30, 0.0 }
 0x2b1   :  { %326 = vadd.xlane.f32.xlu0 %v325_v31  ;;  %v570_v35 = vpop.permute.xlu1 %569 }
 0x2b3   :  { %v2163_v32 = vpop.eup %2162 }
 0x2b4   :  { %v328_v33 = vsel %vm159_vm2, %v2163_v32, 0.0 }
 0x2b5   :  { %329 = vadd.xlane.f32.xlu1 %v328_v33 }
 0x2c6   :  { %567 = vrot.lane.b32.xlu1 %v2385_v15, %s2252_s25 }
 0x2c7   :  { %489 = vrot.lane.b32.xlu0 %v2377_v13, %s2252_s25 }
 0x33a   :  { %v327_v36 = vpop.xlane.xlu0 %326 }
 0x33b   :  { %2164 = vrcp.f32 %v327_v36 }
 0x33e   :  { %v330_v37 = vpop.xlane.xlu1 %329  ;;  %v490_v42 = vpop.permute.xlu0 %489 }
 0x33f   :  { %2166 = vrcp.f32 %v330_v37 }
 0x342   :  { %v568_v43 = vpop.permute.xlu1 %567 }
 0x348   :  { %v2165_v38 = vpop.eup %2164 }
 0x349   :  { %v333_v39 = vmul.f32 %v2165_v38, %v2161_v30 }
 0x34b   :  { %2033 = vmatmul.mubr.msk.f32.vlgmr.msra.gmra.mxu0 %vm159_vm2, %v333_v39 }
 0x34c   :  { %v2167_v40 = vpop.eup %2166  ;;  %2041 = vmatpush3.xpose.msk.msra.mxu0 %vm159_vm2, %v492_v34  ;;  %2042 = vmatprep.mubr.msk.f32.mxu0 %vm2248_vm1, %v2247_v6 }
 0x34d   :  { %v334_v41 = vmul.f32 %v2167_v40, %v2163_v32  ;;  %2050 = vmatprep.subr.mxu0 %v2247_v6 }
 0x34f   :  { %2038 = vmatmul.mubr.msk.f32.vlgmr.msra.gmra.mxu1 %vm159_vm2, %v334_v41  ;;  %2043 = vmatmul.mubr.msk.f32.vlgmr.msra.gmra.mxu0 %vm159_vm2, %v490_v42 }
 0x350   :  { %2046 = vmatpush3.xpose.msk.msra.mxu1 %vm159_vm2, %v570_v35  ;;  %2047 = vmatprep.mubr.msk.f32.mxu1 %vm2248_vm1, %v2247_v6 }
 0x351   :  { %2055 = vmatprep.subr.mxu1 %v2247_v6  ;;  %2052 = vmatprep.mubr.msk.f32.mxu0 %vm2248_vm1, %v2247_v6 }
 0x353   :  { %2048 = vmatmul.mubr.msk.f32.vlgmr.msra.gmra.mxu1 %vm159_vm2, %v568_v43 }
 0x354   :  { %2057 = vmatprep.mubr.msk.f32.mxu1 %vm2248_vm1, %v2247_v6 }
 0x40b   :  { %v407_v44 = vpop.f32.mrf.mxu0 }
 0x40c   :  { %487 = vst.msk [vmem:[#allocation2] sm:$0xff] %vm159_vm2, %v407_v44 }
 0x40d   :  { %v2034_v45 = vpop.f32.mrf.mxu0 }
 0x40f   :  { %v483_v46 = vpop.f32.mrf.mxu1  ;;  %v563_v47 = vpop.f32.mrf.mxu0 }
 0x410   :  { %488 = vst.msk [vmem:[#allocation2 + $0x8] sm:$0xff] %vm159_vm2, %v483_v46  ;;  %v645_v48 = vsel %vm159_vm2, %v563_v47, -inf }
 0x411   :  { %646 = vmax.xlane.f32.xlu1 %v645_v48  ;;  %v2039_v49 = vpop.f32.mrf.mxu1  ;;  %v2044_v50 = vpop.f32.mrf.mxu0 }
 0x413   :  { %v641_v51 = vpop.f32.mrf.mxu1 }
 0x414   :  { %v648_v52 = vsel %vm159_vm2, %v641_v51, -inf }
 0x415   :  { %649 = vmax.xlane.f32.xlu0 %v648_v52  ;;  %v2049_v53 = vpop.f32.mrf.mxu1 }
 0x422   :  { %667 = vrot.lane.b32.xlu1 %v2368_v10, %s2253_s26 }
 0x426   :  { %832 = vrot.lane.b32.xlu1 %v2368_v10, %s2254_s27 }
 0x42a   :  { %910 = vrot.lane.b32.xlu1 %v2371_v11, %s2254_s27 }
 0x42b   :  { %743 = vrot.lane.b32.xlu0 %v2371_v11, %s2253_s26 }
 0x42f   :  { %830 = vrot.lane.b32.xlu0 %v2377_v13, %s2255_s30 }
 0x49a   :  { %v647_v54 = vpop.xlane.xlu1 %646 }
 0x49b   :  { %v651_v55 = vsub.f32 %v563_v47, %v647_v54 }
 0x49d   :  { %v653_v56 = vmul.f32 1.442695, %v651_v55 }
 0x49e   :  { %v668_v57 = vpop.permute.xlu1 %667  ;;  %v650_v58 = vpop.xlane.xlu0 %649 }
 0x49f   :  { %2168 = vpow2.f32 %v653_v56  ;;  %v652_v59 = vsub.f32 %v641_v51, %v650_v58  ;;  %2051 = vmatpush3.msra.mxu0 %v668_v57 }
 0x4a0   :  { %2060 = vmatprep.subr.mxu0 %v2247_v6 }
 0x4a1   :  { %v655_v60 = vmul.f32 1.442695, %v652_v59 }
 0x4a2   :  { %v744_v61 = vpop.permute.xlu0 %743  ;;  %v833_v3 = vpop.permute.xlu1 %832 }
 0x4a3   :  { %2170 = vpow2.f32 %v655_v60  ;;  %2056 = vmatpush3.msra.mxu1 %v744_v61 }
 0x4a4   :  { %2065 = vmatprep.subr.mxu1 %v2247_v6 }
 0x4a6   :  { %v911_v4 = vpop.permute.xlu1 %910  ;;  %v831_v17 = vpop.permute.xlu0 %830 }
 0x4ac   :  { %v2169_v62 = vpop.eup %2168 }
 0x4ad   :  { %v657_v63 = vsel %vm159_vm2, %v2169_v62, 0.0 }
 0x4ae   :  { %658 = vadd.xlane.f32.xlu1 %v657_v63 }
 0x4b0   :  { %v2171_v0 = vpop.eup %2170 }
 0x4b1   :  { %v660_v1 = vsel %vm159_vm2, %v2171_v0, 0.0 }
 0x4b2   :  { %661 = vadd.xlane.f32.xlu1 %v660_v1 }
 0x4c3   :  { %908 = vrot.lane.b32.xlu1 %v2385_v15, %s2255_s30 }
 0x537   :  { %v659_v7 = vpop.xlane.xlu1 %658 }
 0x538   :  { %2172 = vrcp.f32 %v659_v7 }
 0x53b   :  { %v662_v8 = vpop.xlane.xlu1 %661 }
 0x53c   :  { %2174 = vrcp.f32 %v662_v8 }
 0x53f   :  { %v909_v18 = vpop.permute.xlu1 %908 }
 0x545   :  { %v2173_v9 = vpop.eup %2172 }
 0x546   :  { %v665_v12 = vmul.f32 %v2173_v9, %v2169_v62 }
 0x548   :  { %2053 = vmatmul.mubr.msk.f32.vlgmr.msra.gmra.mxu0 %vm159_vm2, %v665_v12 }
 0x549   :  { %v2175_v14 = vpop.eup %2174  ;;  %2061 = vmatpush3.xpose.msk.msra.mxu0 %vm159_vm2, %v833_v3  ;;  %2062 = vmatprep.mubr.msk.f32.mxu0 %vm2248_vm1, %v2247_v6 }
 0x54a   :  { %v666_v16 = vmul.f32 %v2175_v14, %v2171_v0  ;;  %2070 = vmatprep.subr.mxu0 %v2247_v6 }
 0x54c   :  { %2058 = vmatmul.mubr.msk.f32.vlgmr.msra.gmra.mxu1 %vm159_vm2, %v666_v16  ;;  %2063 = vmatmul.mubr.msk.f32.vlgmr.msra.gmra.mxu0 %vm159_vm2, %v831_v17 }
 0x54d   :  { %2066 = vmatpush3.xpose.msk.msra.mxu1 %vm159_vm2, %v911_v4  ;;  %2067 = vmatprep.mubr.msk.f32.mxu1 %vm2248_vm1, %v2247_v6 }
 0x54e   :  { %2075 = vmatprep.subr.mxu1 %v2247_v6  ;;  %2072 = vmatprep.mubr.msk.f32.mxu0 %vm2248_vm1, %v2247_v6 }
 0x550   :  { %2068 = vmatmul.mubr.msk.f32.vlgmr.msra.gmra.mxu1 %vm159_vm2, %v909_v18 }
 0x551   :  { %2077 = vmatprep.mubr.msk.f32.mxu1 %vm2248_vm1, %v2247_v6 }
 0x608   :  { %v2450_v19 = vpop.f32.mrf.mxu0 }
 0x60a   :  { %v2054_v20 = vpop.f32.mrf.mxu0 }
 0x60c   :  { %v2452_v21 = vpop.f32.mrf.mxu1  ;;  %v904_v22 = vpop.f32.mrf.mxu0 }
 0x60d   :  { %v986_v23 = vsel %vm159_vm2, %v904_v22, -inf }
 0x60e   :  { %987 = vmax.xlane.f32.xlu0 %v986_v23  ;;  %v2059_v24 = vpop.f32.mrf.mxu1  ;;  %v2064_v25 = vpop.f32.mrf.mxu0  ;;  %v1515_v23 = vld [vmem:[%s2590_s3 + $0x8] sm:$0xff] }
 0x60f   :  { %v1514_v24 = vld [vmem:[%s2590_s3] sm:$0xff] }
 0x610   :  { %v982_v26 = vpop.f32.mrf.mxu1 }
 0x611   :  { %v989_v27 = vsel %vm159_vm2, %v982_v26, -inf }
 0x612   :  { %990 = vmax.xlane.f32.xlu1 %v989_v27  ;;  %v2069_v28 = vpop.f32.mrf.mxu1 }
 0x623   :  { %1008 = vrot.lane.b32.xlu1 %v2368_v10, %s2256_s14 }
 0x624   :  { %1084 = vrot.lane.b32.xlu0 %v2371_v11, %s2256_s14 }
 0x627   :  { %1173 = vrot.lane.b32.xlu1 %v2368_v10, %s2257_s15 }
 0x62b   :  { %1251 = vrot.lane.b32.xlu1 %v2371_v11, %s2257_s15 }
 0x62f   :  { %1249 = vrot.lane.b32.xlu1 %v2385_v15, %s2258_s16 }
 0x697   :  { %v988_v29 = vpop.xlane.xlu0 %987 }
 0x698   :  { %v992_v30 = vsub.f32 %v904_v22, %v988_v29  ;;  %v1516_v22 = vld [vmem:[%s2590_s3 + $0x10] sm:$0xff] }
 0x69a   :  { %v994_v31 = vmul.f32 1.442695, %v992_v30 }
 0x69b   :  { %v1085_v32 = vpop.permute.xlu0 %1084  ;;  %v991_v33 = vpop.xlane.xlu1 %990 }
 0x69c   :  { %2176 = vpow2.f32 %v994_v31  ;;  %v993_v34 = vsub.f32 %v982_v26, %v991_v33  ;;  %2076 = vmatpush3.msra.mxu1 %v1085_v32  ;;  %v1936_v33 = vld [vmem:[%s2591_s4] ss:$0 sm:$0xff] }
 0x69d   :  { %2085 = vmatprep.subr.mxu1 %v2247_v6 }
 0x69e   :  { %v996_v35 = vmul.f32 1.442695, %v993_v34 }
 0x69f   :  { %v1009_v36 = vpop.permute.xlu1 %1008 }
 0x6a0   :  { %2178 = vpow2.f32 %v996_v35  ;;  %2071 = vmatpush3.msra.mxu0 %v1009_v36 }
 0x6a1   :  { %2080 = vmatprep.subr.mxu0 %v2247_v6 }
 0x6a3   :  { %v1174_v42 = vpop.permute.xlu1 %1173 }
 0x6a7   :  { %v1252_v46 = vpop.permute.xlu1 %1251 }
 0x6a9   :  { %v2177_v37 = vpop.eup %2176 }
 0x6aa   :  { %v998_v38 = vsel %vm159_vm2, %v2177_v37, 0.0 }
 0x6ab   :  { %999 = vadd.xlane.f32.xlu0 %v998_v38  ;;  %v1250_v48 = vpop.permute.xlu1 %1249 }
 0x6ad   :  { %v2179_v15 = vpop.eup %2178 }
 0x6ae   :  { %v1001_v39 = vsel %vm159_vm2, %v2179_v15, 0.0 }
 0x6af   :  { %1002 = vadd.xlane.f32.xlu0 %v1001_v39 }
 0x6c5   :  { %1171 = vrot.lane.b32.xlu0 %v2377_v13, %s2258_s16 }
 0x734   :  { %v1000_v40 = vpop.xlane.xlu0 %999 }
 0x735   :  { %2180 = vrcp.f32 %v1000_v40 }
 0x738   :  { %v1003_v41 = vpop.xlane.xlu0 %1002 }
 0x739   :  { %2182 = vrcp.f32 %v1003_v41 }
 0x73c   :  { %v1172_v13 = vpop.permute.xlu0 %1171 }
 0x742   :  { %v2181_v43 = vpop.eup %2180 }
 0x743   :  { %v1006_v44 = vmul.f32 %v2181_v43, %v2177_v37 }
 0x745   :  { %2073 = vmatmul.mubr.msk.f32.vlgmr.msra.gmra.mxu0 %vm159_vm2, %v1006_v44 }
 0x746   :  { %v2183_v45 = vpop.eup %2182  ;;  %2081 = vmatpush3.xpose.msk.msra.mxu0 %vm159_vm2, %v1174_v42  ;;  %2082 = vmatprep.mubr.msk.f32.mxu0 %vm2248_vm1, %v2247_v6 }
 0x747   :  { %v1007_v47 = vmul.f32 %v2183_v45, %v2179_v15  ;;  %2090 = vmatprep.subr.mxu0 %v2247_v6 }
 0x749   :  { %2078 = vmatmul.mubr.msk.f32.vlgmr.msra.gmra.mxu1 %vm159_vm2, %v1007_v47  ;;  %2083 = vmatmul.mubr.msk.f32.vlgmr.msra.gmra.mxu0 %vm159_vm2, %v1172_v13 }
 0x74a   :  { %2086 = vmatpush3.xpose.msk.msra.mxu1 %vm159_vm2, %v1252_v46  ;;  %2087 = vmatprep.mubr.msk.f32.mxu1 %vm2248_vm1, %v2247_v6 }
 0x74b   :  { %2095 = vmatprep.subr.mxu1 %v2247_v6  ;;  %2092 = vmatprep.mubr.msk.f32.mxu0 %vm2248_vm1, %v2247_v6 }
 0x74d   :  { %2088 = vmatmul.mubr.msk.f32.vlgmr.msra.gmra.mxu1 %vm159_vm2, %v1250_v48 }
 0x74e   :  { %2097 = vmatprep.mubr.msk.f32.mxu1 %vm2248_vm1, %v2247_v6 }
 0x805   :  { %v1080_v49 = vpop.f32.mrf.mxu0 }
 0x807   :  { %v2074_v50 = vpop.f32.mrf.mxu0 }
 0x808   :  { %v1654_v50 = vld [vmem:[%s2592_s5 + $0x8] sm:$0xff] }
 0x809   :  { %v1156_v51 = vpop.f32.mrf.mxu1  ;;  %v1245_v52 = vpop.f32.mrf.mxu0 }
 0x80a   :  { %v1327_v53 = vsel %vm159_vm2, %v1245_v52, -inf }
 0x80b   :  { %1328 = vmax.xlane.f32.xlu0 %v1327_v53  ;;  %v2079_v54 = vpop.f32.mrf.mxu1  ;;  %v2084_v55 = vpop.f32.mrf.mxu0  ;;  %v1753_v53 = vld [vmem:[%s2594_s7 + $0x30] sm:$0xff] }
 0x80c   :  { %v1752_v54 = vld [vmem:[%s2594_s7 + $0x28] sm:$0xff]  ;;  %v1751_v55 = vld [vmem:[%s2594_s7 + $0x20] sm:$0xff] }
 0x80d   :  { %v1323_v56 = vpop.f32.mrf.mxu1 }
 0x80e   :  { %v1330_v57 = vsel %vm159_vm2, %v1323_v56, -inf }
 0x80f   :  { %1331 = vmax.xlane.f32.xlu1 %v1330_v57  ;;  %v2089_v58 = vpop.f32.mrf.mxu1 }
 0x820   :  { %1349 = vrot.lane.b32.xlu1 %v2368_v10, %s2259_s17 }
 0x824   :  { %821 = vrot.lane.b32.xlu1 %v2450_v19, %s2246_s29 }
 0x828   :  { %823 = vrot.lane.b32.xlu1 %v2452_v21, %s2246_s29 }
 0x82c   :  { %1164 = vrot.lane.b32.xlu1 %v1156_v51, %s2260_s18  ;;  %v1653_v51 = vld [vmem:[%s2592_s5] sm:$0xff] }
 0x894   :  { %v1329_v6 = vpop.xlane.xlu0 %1328 }
 0x895   :  { %v1333_v59 = vsub.f32 %v1245_v52, %v1329_v6  ;;  %v1754_v52 = vld [vmem:[%s2594_s7 + $0x38] sm:$0xff] }
 0x897   :  { %v1335_v60 = vmul.f32 1.442695, %v1333_v59 }
 0x898   :  { %v1332_v61 = vpop.xlane.xlu1 %1331 }
 0x899   :  { %2184 = vpow2.f32 %v1335_v60  ;;  %v1334_v62 = vsub.f32 %v1323_v56, %v1332_v61 }
 0x89b   :  { %v1337_v63 = vmul.f32 1.442695, %v1334_v62  ;;  %v1939_v62 = vld [vmem:[%s2596_s9] ss:$0 sm:$0xff] }
 0x89c   :  { %v1350_v0 = vpop.permute.xlu1 %1349 }
 0x89d   :  { %2186 = vpow2.f32 %v1337_v63  ;;  %2091 = vmatpush3.msra.mxu0 %v1350_v0  ;;  %v1940_v0 = vld [vmem:[%s2597_s10] ss:$0 sm:$0xff] }
 0x8a0   :  { %v822_v10 = vpop.permute.xlu1 %821 }
 0x8a1   :  { %828 = vst.msk [vmem:[#allocation2] sm:$0xff] %vm827_vm3, %v822_v10 }
 0x8a4   :  { %v824_v1 = vpop.permute.xlu1 %823 }
 0x8a5   :  { %829 = vst.msk [vmem:[#allocation2 + $0x8] sm:$0xff] %vm827_vm3, %v824_v1 }
 0x8a6   :  { %v2185_v3 = vpop.eup %2184 }
 0x8a7   :  { %v1339_v4 = vsel %vm159_vm2, %v2185_v3, 0.0 }
 0x8a8   :  { %1340 = vadd.xlane.f32.xlu0 %v1339_v4  ;;  %v1165_v7 = vpop.permute.xlu1 %1164 }
 0x8a9   :  { %1170 = vst.msk [vmem:[#allocation2 + $0x8] sm:$0xff] %vm1168_vm4, %v1165_v7 }
 0x8aa   :  { %v2187_v8 = vpop.eup %2186 }
 0x8ab   :  { %v1342_v9 = vsel %vm159_vm2, %v2187_v8, 0.0 }
 0x8ac   :  { %1343 = vadd.xlane.f32.xlu0 %v1342_v9  ;;  %v1750_v9 = vld [vmem:[%s2594_s7 + $0x18] sm:$0xff] }
 0x8c2   :  { %1425 = vrot.lane.b32.xlu0 %v2371_v11, %s2259_s17  ;;  %v1517_v11 = vld [vmem:[%s2590_s3 + $0x18] sm:$0xff] }
 0x8c3   :  { %2100 = vmatprep.subr.mxu0 %v1517_v11 }
 0x8c6   :  { %1162 = vrot.lane.b32.xlu0 %v1080_v49, %s2260_s18  ;;  %v1655_v49 = vld [vmem:[%s2592_s5 + $0x10] sm:$0xff] }
 0x931   :  { %v1341_v12 = vpop.xlane.xlu0 %1340 }
 0x932   :  { %2188 = vrcp.f32 %v1341_v12  ;;  %v1749_v12 = vld [vmem:[%s2594_s7 + $0x10] sm:$0xff] }
 0x935   :  { %v1344_v14 = vpop.xlane.xlu0 %1343 }
 0x936   :  { %2190 = vrcp.f32 %v1344_v14  ;;  %v1748_v14 = vld [vmem:[%s2594_s7 + $0x8] sm:$0xff] }
 0x939   :  { %v1426_v16 = vpop.permute.xlu0 %1425 }
 0x93a   :  { %2096 = vmatpush3.msra.mxu1 %v1426_v16  ;;  %v1747_v16 = vld [vmem:[%s2594_s7] sm:$0xff] }
 0x93d   :  { %v1163_v17 = vpop.permute.xlu0 %1162 }
 0x93e   :  { %1169 = vst.msk [vmem:[#allocation2] sm:$0xff] %vm1168_vm4, %v1163_v17  ;;  %v1941_v17 = vld [vmem:[%s2593_s6] ss:$0 sm:$0xff] }
 0x93f   :  { %v2189_v18 = vpop.eup %2188 }
 0x940   :  { %v1347_v19 = vmul.f32 %v2189_v18, %v2185_v3 }
 0x942   :  { %2093 = vmatmul.mubr.msk.f32.vlgmr.msra.gmra.mxu0 %vm159_vm2, %v1347_v19 }
 0x943   :  { %v2191_v20 = vpop.eup %2190  ;;  %2101 = vmatpush3.msra.mxu0 %v1517_v11 }
 0x944   :  { %v1348_v21 = vmul.f32 %v2191_v20, %v2187_v8  ;;  %2102 = vmatprep.subr.mxu0 %v1516_v22 }
 0x945   :  { %2103 = vmatpush3.msra.mxu0 %v1516_v22 }
 0x946   :  { %2098 = vmatmul.mubr.msk.f32.vlgmr.msra.gmra.mxu1 %vm159_vm2, %v1348_v21  ;;  %2104 = vmatprep.subr.mxu0 %v1515_v23 }
 0x947   :  { %2105 = vmatpush3.msra.mxu0 %v1515_v23  ;;  %v1944_v23 = vld [vmem:[%s2595_s8] ss:$0 sm:$0xff] }
 0x948   :  { %2106 = vmatprep.subr.mxu0 %v1514_v24 }
 0x949   :  { %2107 = vmatpush3.msra.mxu0 %v1514_v24 }
 0x94a   :  { %2122 = vmatprep.subr.mxu0 %v1754_v52 }
 0xa02   :  { %v1421_v25 = vpop.f32.mrf.mxu0 }
 0xa03   :  { %1503 = vrot.lane.b32.xlu0 %v1421_v25, %s2261_s24 }
 0xa04   :  { %v2094_v26 = vpop.f32.mrf.mxu0 }
 0xa06   :  { %v1497_v27 = vpop.f32.mrf.mxu1 }
 0xa07   :  { %1505 = vrot.lane.b32.xlu1 %v1497_v27, %s2261_s24 }
 0xa08   :  { %v2099_v28 = vpop.f32.mrf.mxu1 }
 0xa75   :  { %v1504_v29 = vpop.permute.xlu0 %1503 }
 0xa76   :  { %1510 = vst.msk [vmem:[#allocation2] sm:$0xff] %vm1509_vm5, %v1504_v29 }
 0xa79   :  { %v1506_v30 = vpop.permute.xlu1 %1505 }
 0xa7a   :  { %1511 = vst.msk [vmem:[#allocation2 + $0x8] sm:$0xff] %vm1509_vm5, %v1506_v30 }
 0xa7d   :  { %v1512_v31 = vld [vmem:[#allocation2] sm:$0xff] }
 0xa7e   :  { %2108 = vmatprep.mubr.msk.f32.mxu0 %vm72_vm0, %v1512_v31 }
 0xa81   :  { %v1513_v32 = vld [vmem:[#allocation2 + $0x8] sm:$0xff] }
 0xa82   :  { %2109 = vmatmul.mubr.msk.f32.vlgmr.msra.gmra.mxu0 %vm72_vm0, %v1513_v32 }
 0xa83   :  { %2123 = vmatpush3.msra.mxu0 %v1754_v52 }
 0xa84   :  { %2124 = vmatprep.subr.mxu0 %v1753_v53 }
 0xa85   :  { %2125 = vmatpush3.msra.mxu0 %v1753_v53 }
 0xa86   :  { %2126 = vmatprep.subr.mxu0 %v1752_v54 }
 0xa87   :  { %2127 = vmatpush3.msra.mxu0 %v1752_v54 }
 0xa88   :  { %2128 = vmatprep.subr.mxu0 %v1751_v55 }
 0xa89   :  { %2129 = vmatpush3.msra.mxu0 %v1751_v55 }
 0xa8a   :  { %2130 = vmatprep.subr.mxu0 %v1750_v9 }
 0xa8b   :  { %2131 = vmatpush3.msra.mxu0 %v1750_v9 }
 0xa8c   :  { %2132 = vmatprep.subr.mxu0 %v1749_v12 }
 0xa8d   :  { %2133 = vmatpush3.msra.mxu0 %v1749_v12 }
 0xa8e   :  { %2134 = vmatprep.subr.mxu0 %v1748_v14 }
 0xa8f   :  { %2135 = vmatpush3.msra.mxu0 %v1748_v14 }
 0xa90   :  { %2136 = vmatprep.subr.mxu0 %v1747_v16 }
 0xa91   :  { %2137 = vmatpush3.msra.mxu0 %v1747_v16 }
 0xb42   :  { %v2110_v34 = vpop.f32.mrf.mxu0 }
 0xb43   :  { %v1603_v35 = vadd.f32 %v2110_v34, %v1936_v33 }
 0xb44   :  { %v1597_v36 = vpop.f32.mrf.mxu0 }
 0xb45   :  { %v1598_v37 = vadd.f32 %v1936_v33, %v1597_v36  ;;  %v1607_v38 = vadd.f32 %v1603_v35, %v2355_v5 }
 0xb47   :  { %v1611_v15 = vsel %vm72_vm0, %v1607_v38, 0.0  ;;  %v1606_v39 = vadd.f32 %v1598_v37, %v2345_v2  ;;  %v1656_v2 = vld [vmem:[%s2592_s5 + $0x18] sm:$0xff] }
 0xb48   :  { %1612 = vadd.xlane.f32.xlu1 %v1611_v15  ;;  %2111 = vmatprep.subr.mxu1 %v1656_v2 }
 0xb49   :  { %v1608_v40 = vsel %vm72_vm0, %v1606_v39, 0.0  ;;  %2112 = vmatpush3.msra.mxu1 %v1656_v2  ;;  %v1948_v2 = vld [vmem:[%s2599_s12] ss:$0 sm:$0xff] }
 0xb4a   :  { %1609 = vadd.xlane.f32.xlu0 %v1608_v40  ;;  %2113 = vmatprep.subr.mxu1 %v1655_v49 }
 0xb4b   :  { %2114 = vmatpush3.msra.mxu1 %v1655_v49 }
 0xb4c   :  { %2115 = vmatprep.subr.mxu1 %v1654_v50 }
 0xb4d   :  { %2116 = vmatpush3.msra.mxu1 %v1654_v50 }
 0xb4e   :  { %2117 = vmatprep.subr.mxu1 %v1653_v51 }
 0xb4f   :  { %2118 = vmatpush3.msra.mxu1 %v1653_v51 }
 0xbd1   :  { %v1613_v41 = vpop.xlane.xlu1 %1612 }
 0xbd2   :  { %v1616_v42 = vmul.f32 0.03125, %v1613_v41 }
 0xbd3   :  { %v1610_v43 = vpop.xlane.xlu0 %1609 }
 0xbd4   :  { %v1615_v44 = vmul.f32 0.03125, %v1610_v43  ;;  %v1618_v45 = vsub.f32 %v1607_v38, %v1616_v42 }
 0xbd6   :  { %v1617_v46 = vsub.f32 %v1606_v39, %v1615_v44  ;;  %v1620_v48 = vmul.f32 %v1618_v45, %v1618_v45 }
 0xbd8   :  { %v1619_v47 = vmul.f32 %v1617_v46, %v1617_v46  ;;  %v1624_v5 = vsel %vm72_vm0, %v1620_v48, 0.0 }
 0xbda   :  { %v1621_v13 = vsel %vm72_vm0, %v1619_v47, 0.0 }
 0xbdb   :  { %1622 = vadd.xlane.f32.xlu0 %v1621_v13  ;;  %v1947_v13 = vld [vmem:[%s2598_s11] ss:$0 sm:$0xff] }
 0xbdf   :  { %1625 = vadd.xlane.f32.xlu0 %v1624_v5 }
 0xc64   :  { %v1623_v56 = vpop.xlane.xlu0 %1622 }
 0xc65   :  { %v1627_v57 = vmul.f32 0.03125, %v1623_v56 }
 0xc67   :  { %v1629_v58 = vadd.f32 1e-05, %v1627_v57 }
 0xc68   :  { %v1626_v6 = vpop.xlane.xlu0 %1625 }
 0xc69   :  { %2192 = vrsqrt.f32 %v1629_v58  ;;  %v1628_v59 = vmul.f32 0.03125, %v1626_v6 }
 0xc6b   :  { %v1630_v60 = vadd.f32 1e-05, %v1628_v59 }
 0xc6d   :  { %2194 = vrsqrt.f32 %v1630_v60 }
 0xc76   :  { %v2193_v61 = vpop.eup %2192 }
 0xc77   :  { %v1633_v63 = vmul.f32 %v2193_v61, %v1617_v46 }
 0xc79   :  { %v1642_v10 = vmul.f32 %v1939_v62, %v1633_v63 }
 0xc7a   :  { %v2195_v1 = vpop.eup %2194 }
 0xc7b   :  { %v1634_v3 = vmul.f32 %v2195_v1, %v1618_v45  ;;  %v1651_v4 = vadd.f32 %v1940_v0, %v1642_v10 }
 0xc7d   :  { %v1643_v7 = vmul.f32 %v1939_v62, %v1634_v3  ;;  %2119 = vmatprep.mubr.msk.f32.mxu1 %vm72_vm0, %v1651_v4 }
 0xc7f   :  { %v1652_v8 = vadd.f32 %v1940_v0, %v1643_v7 }
 0xc81   :  { %2120 = vmatmul.mubr.msk.f32.vlgmr.msra.gmra.mxu1 %vm72_vm0, %v1652_v8 }
 0xd41   :  { %v2121_v18 = vpop.f32.mrf.mxu1 }
 0xd42   :  { %v1742_v19 = vadd.f32 %v2121_v18, %v1941_v17 }
 0xd43   :  { %v1736_v20 = vpop.f32.mrf.mxu1 }
 0xd44   :  { %v1737_v21 = vadd.f32 %v1941_v17, %v1736_v20  ;;  %v1746_v22 = vmax.f32 %v1742_v19, 0.0 }
 0xd46   :  { %v1745_v11 = vmax.f32 %v1737_v21, 0.0 }
 0xd48   :  { %2138 = vmatprep.mubr.msk.f32.mxu0 %vm1762_vm6, %v1745_v11 }
 0xd49   :  { %2139 = vmatmul.mubr.msk.f32.vlgmr.msra.gmra.mxu0 %vm1762_vm6, %v1746_v22 }
 0xe09   :  { %v2140_v24 = vpop.f32.mrf.mxu0 }
 0xe0a   :  { %v1841_v25 = vadd.f32 %v2140_v24, %v1944_v23 }
 0xe0b   :  { %v1835_v26 = vpop.f32.mrf.mxu0 }
 0xe0c   :  { %v1836_v27 = vadd.f32 %v1944_v23, %v1835_v26  ;;  %v1845_v28 = vadd.f32 %v1841_v25, %v1652_v8 }
 0xe0e   :  { %v1849_v29 = vsel %vm72_vm0, %v1845_v28, 0.0  ;;  %v1844_v30 = vadd.f32 %v1836_v27, %v1651_v4 }
 0xe0f   :  { %1850 = vadd.xlane.f32.xlu0 %v1849_v29 }
 0xe10   :  { %v1846_v31 = vsel %vm72_vm0, %v1844_v30, 0.0 }
 0xe11   :  { %1847 = vadd.xlane.f32.xlu1 %v1846_v31 }
 0xe98   :  { %v1851_v32 = vpop.xlane.xlu0 %1850 }
 0xe99   :  { %v1853_v33 = vmul.f32 0.03125, %v1851_v32 }
 0xe9a   :  { %v1848_v34 = vpop.xlane.xlu1 %1847 }
 0xe9b   :  { %v1855_v35 = vsub.f32 %v1845_v28, %v1853_v33  ;;  %v1852_v36 = vmul.f32 0.03125, %v1848_v34 }
 0xe9d   :  { %v1854_v37 = vsub.f32 %v1844_v30, %v1852_v36  ;;  %v1857_v38 = vmul.f32 %v1855_v35, %v1855_v35 }
 0xe9f   :  { %v1861_v15 = vsel %vm72_vm0, %v1857_v38, 0.0  ;;  %v1856_v39 = vmul.f32 %v1854_v37, %v1854_v37 }
 0xea0   :  { %1862 = vadd.xlane.f32.xlu0 %v1861_v15 }
 0xea1   :  { %v1858_v40 = vsel %vm72_vm0, %v1856_v39, 0.0 }
 0xea2   :  { %1859 = vadd.xlane.f32.xlu1 %v1858_v40 }
 0xf29   :  { %v1863_v41 = vpop.xlane.xlu0 %1862 }
 0xf2a   :  { %v1865_v42 = vmul.f32 0.03125, %v1863_v41 }
 0xf2b   :  { %v1860_v43 = vpop.xlane.xlu1 %1859 }
 0xf2c   :  { %v1867_v44 = vadd.f32 1e-05, %v1865_v42  ;;  %v1864_v45 = vmul.f32 0.03125, %v1860_v43 }
 0xf2e   :  { %2196 = vrsqrt.f32 %v1867_v44  ;;  %v1866_v46 = vadd.f32 1e-05, %v1864_v45 }
 0xf30   :  { %2198 = vrsqrt.f32 %v1866_v46 }
 0xf3b   :  { %v2197_v47 = vpop.eup %2196 }
 0xf3c   :  { %v1871_v48 = vmul.f32 %v2197_v47, %v1855_v35 }
 0xf3d   :  { %v2199_v5 = vpop.eup %2198 }
 0xf3e   :  { %v1870_v49 = vmul.f32 %v2199_v5, %v1854_v37  ;;  %v1880_v50 = vmul.f32 %v1947_v13, %v1871_v48 }
 0xf40   :  { %v1879_v51 = vmul.f32 %v1947_v13, %v1870_v49  ;;  %v1889_v52 = vadd.f32 %v1948_v2, %v1880_v50 }
 0xf42   :  { %v1888_v53 = vadd.f32 %v1948_v2, %v1879_v51  ;;  %1891 = vst.msk [vmem:[#allocation6 + $0x8] sm:$0xff] %vm72_vm0, %v1889_v52 }
 0xf44   :  { %1890 = vst.msk [vmem:[#allocation6] sm:$0xff] %vm72_vm0, %v1888_v53 }
 0xf45   :  { %2231 = shalt.err (!%p2228_p9)
}
 0xf46   :  { %1903 = dma.vmem_to_hbm [thread:$0]  %s1898_s0, 256, %s2600_s13, [#allocation5], %s2245_s28, %s2245_s28, %s2246_s29  }
 0xf47   :  { %2242 = dma.done.wait [#allocation5], 256  }
 0xf48   :  { %2243 = vsyncadd [#allocation5], 4294967040 }
 0xf49   :  { %1907 = vsyncpa [#allocation4], 1 }
 0xf4a   :  { %1908 = vsyncpa [#allocation5], 1 }

// kernel: tpu_custom_call.1
= control target key start
LH: loop header
LB: loop body
LE: loop exit
PB: predicated region body
PF: predicated region fallthrough
CT: control target
= control target key end

     0   :  { %18 = vsyncpa [#allocation4], 0  ;;  %s2587_s0 = inlined_call_operand.hbm [shape: f32[2,8,32], index: 0, kind: input, shape index: {}]   ;;  %s2588_s1 = inlined_call_operand.vmem [shape: f32[32,96], index: 1, kind: input, shape index: {}]   ;;  %s2589_s2 = inlined_call_operand.vmem [shape: f32[1,96], index: 2, kind: input, shape index: {}]   ;;  %s2590_s3 = inlined_call_operand.vmem [shape: f32[32,32], index: 3, kind: input, shape index: {}]   ;;  %s2591_s4 = inlined_call_operand.vmem [shape: f32[1,32], index: 4, kind: input, shape index: {}]   ;;  %s2592_s5 = inlined_call_operand.vmem [shape: f32[32,64], index: 5, kind: input, shape index: {}]   ;;  %s2593_s6 = inlined_call_operand.vmem [shape: f32[1,64], index: 6, kind: input, shape index: {}]   ;;  %s2594_s7 = inlined_call_operand.vmem [shape: f32[64,32], index: 7, kind: input, shape index: {}]   ;;  %s2595_s8 = inlined_call_operand.vmem [shape: f32[1,32], index: 8, kind: input, shape index: {}]   ;;  %s2596_s9 = inlined_call_operand.vmem [shape: f32[1,32], index: 9, kind: input, shape index: {}]   ;;  %s2597_s10 = inlined_call_operand.vmem [shape: f32[1,32], index: 10, kind: input, shape index: {}]   ;;  %s2598_s11 = inlined_call_operand.vmem [shape: f32[1,32], index: 11, kind: input, shape index: {}]   ;;  %s2599_s12 = inlined_call_operand.vmem [shape: f32[1,32], index: 12, kind: input, shape index: {}]   ;;  %s2600_s13 = inlined_call_operand.hbm [shape: f32[2,8,32], index: 13, kind: output, shape index: {}]  }
   0x1   :  { %19 = vsyncpa [#allocation5], 0  ;;  %s2244_s25 = smov [#allocation3]  }
   0x2   :  { %s25_s26 = sshll.u32 %s2244_s25, 4  ;;  %s26_s26 = int_to_ptr.vmem [resolvable:$true] %s25_s26 }
   0x3   :  { %s2208_s27 = scalar_lea.vmem %s26_s26, 256  ;;  %p2213_p1 = scmp.lt.s32.totalorder %s26_s26, %s26_s26 }
   0x4   :  { %p2209_p0 = scmp.ne.s32.totalorder %s26_s26, %s2208_s27  ;;  %p2214_p2 = scmp.lt.s32.totalorder %s2208_s27, %s2208_s27 }
   0x6   :  { %p2215_p3 = por %p2214_p2, %p2213_p1 }
   0x8   :  { %p2216_p4 = pnand %p2215_p3, %p2209_p0 }
   0xa   :  { %2219 = shalt.err (!%p2216_p4)
}
   0xb   :  { %s2245_s28 = smov 128   ;;  %s2246_s29 = smov 8  }
   0xc   :  { %31 = dma.hbm_to_vmem [thread:$0]  %s2587_s0, 256, %s26_s26, [#allocation4], %s2245_s28, %s2245_s28, %s2246_s29  }
   0xd   :  { %2240 = dma.done.wait [#allocation4], 256  }
   0xe   :  { %2241 = vsyncadd [#allocation4], 4294967040  ;;  %vm72_vm0 = vcmask 261120   ;;  %v64_v0 = vld [vmem:[%s2588_s1 + $0x18] sm:$0xff]  ;;  %v63_v1 = vld [vmem:[%s2588_s1 + $0x10] sm:$0xff]  ;;  %v2247_v6 = vmov 0.0  }
   0xf   :  { %2009 = vmatprep.subr.mxu1 %v64_v0  ;;  %v2345_v2 = vld [vmem:[#allocation3] sm:$0xff]  ;;  %v62_v3 = vld [vmem:[%s2588_s1 + $0x8] sm:$0xff]  ;;  %v61_v4 = vld [vmem:[%s2588_s1] sm:$0xff]  ;;  %2030 = vmatprep.subr.mxu0 %v2247_v6  ;;  %vm2248_vm1 = vmmov 0   ;;  %s2249_s23 = smov 96   ;;  %vm159_vm2 = vcmask 64512  }
  0x10   :  { %2010 = vmatpush3.msra.mxu1 %v64_v0  ;;  %2017 = vmatprep.mubr.msk.f32.mxu1 %vm72_vm0, %v2345_v2  ;;  %v2355_v5 = vld [vmem:[#allocation3 + $0x8] sm:$0xff]  ;;  %v1909_v8 = vld [vmem:[%s2589_s2] ss:$0 sm:$0xff]  ;;  %s2250_s2 = smov 64   ;;  %s2251_s24 = smov 88   ;;  %vm827_vm3 = vcmask 130112  }
  0x11   :  { %2011 = vmatprep.subr.mxu1 %v63_v1  ;;  %2032 = vmatprep.mubr.msk.f32.mxu0 %vm2248_vm1, %v2247_v6  ;;  %s2252_s25 = smov 120   ;;  %s2253_s26 = smov 56   ;;  %vm1168_vm4 = vcmask 195712   ;;  %vm1509_vm5 = vcmask 261312   ;;  %vm1762_vm6 = vcmask 523264  }
  0x12   :  { %2012 = vmatpush3.msra.mxu1 %v63_v1  ;;  %s2254_s27 = smov 80   ;;  %s2255_s30 = smov 112  }
  0x13   :  { %2013 = vmatprep.subr.mxu1 %v62_v3  ;;  %s2256_s14 = smov 48   ;;  %s2257_s15 = smov 72  }
  0x14   :  { %2014 = vmatpush3.msra.mxu1 %v62_v3  ;;  %s2258_s16 = smov 104   ;;  %s2259_s17 = smov 40  }
  0x15   :  { %2015 = vmatprep.subr.mxu1 %v61_v4  ;;  %s2260_s18 = smov 16   ;;  %s2262_s20 = smov [#allocation6]  }
  0x16   :  { %2016 = vmatpush3.msra.mxu1 %v61_v4  ;;  %s1897_s0 = sshll.u32 %s2262_s20, 4  ;;  %s1898_s0 = int_to_ptr.vmem [resolvable:$true] %s1897_s0 }
  0x17   :  { %2018 = vmatmul.mubr.msk.f32.vlgmr.msra.gmra.mxu1 %vm72_vm0, %v2355_v5  ;;  %2020 = vmatprep.subr.mxu1 %v2247_v6  ;;  %s2220_s21 = scalar_lea.vmem %s1898_s0, 256  ;;  %p2225_p6 = scmp.lt.s32.totalorder %s1898_s0, %s1898_s0 }
  0x18   :  { %2022 = vmatprep.mubr.msk.f32.mxu1 %vm2248_vm1, %v2247_v6  ;;  %p2221_p5 = scmp.ne.s32.totalorder %s1898_s0, %s2220_s21  ;;  %p2226_p7 = scmp.lt.s32.totalorder %s2220_s21, %s2220_s21 }
  0x1a   :  { %p2227_p8 = por %p2226_p7, %p2225_p6 }
  0x1c   :  { %p2228_p9 = pnand %p2227_p8, %p2221_p5 }
  0xd7   :  { %v2019_v7 = vpop.f32.mrf.mxu1 }
  0xd8   :  { %v2371_v11 = vadd.f32 %v2019_v7, %v1909_v8 }
  0xd9   :  { %v145_v9 = vpop.f32.mrf.mxu1 }
  0xda   :  { %v2368_v10 = vadd.f32 %v1909_v8, %v145_v9  ;;  %v2385_v15 = vmul.f32 0.35355338, %v2371_v11 }
  0xdc   :  { %157 = vrot.lane.b32.xlu0 %v2368_v10, %s2249_s23  ;;  %v2377_v13 = vmul.f32 0.35355338, %v2368_v10 }
  0xe0   :  { %236 = vrot.lane.b32.xlu0 %v2371_v11, %s2249_s23 }
 0x14e   :  { %v158_v12 = vpop.permute.xlu0 %157 }
 0x14f   :  { %2021 = vmatpush3.xpose.msk.msra.mxu1 %vm159_vm2, %v158_v12 }
 0x150   :  { %2025 = vmatprep.subr.mxu1 %v2247_v6 }
 0x152   :  { %v237_v14 = vpop.permute.xlu0 %236  ;;  %2023 = vmatmul.mubr.msk.f32.vlgmr.msra.gmra.mxu1 %vm159_vm2, %v2377_v13 }
 0x153   :  { %2026 = vmatpush3.xpose.msk.msra.mxu1 %vm159_vm2, %v237_v14  ;;  %2027 = vmatprep.mubr.msk.f32.mxu1 %vm2248_vm1, %v2247_v6 }
 0x154   :  { %2035 = vmatprep.subr.mxu1 %v2247_v6 }
 0x156   :  { %2028 = vmatmul.mubr.msk.f32.vlgmr.msra.gmra.mxu1 %vm159_vm2, %v2385_v15 }
 0x157   :  { %2037 = vmatprep.mubr.msk.f32.mxu1 %vm2248_vm1, %v2247_v6 }
 0x212   :  { %v231_v16 = vpop.f32.mrf.mxu1 }
 0x213   :  { %v313_v17 = vsel %vm159_vm2, %v231_v16, -inf }
 0x214   :  { %314 = vmax.xlane.f32.xlu1 %v313_v17  ;;  %v2024_v18 = vpop.f32.mrf.mxu1 }
 0x216   :  { %v309_v19 = vpop.f32.mrf.mxu1 }
 0x217   :  { %v316_v20 = vsel %vm159_vm2, %v309_v19, -inf }
 0x218   :  { %317 = vmax.xlane.f32.xlu1 %v316_v20  ;;  %v2029_v21 = vpop.f32.mrf.mxu1 }
 0x229   :  { %335 = vrot.lane.b32.xlu1 %v2368_v10, %s2250_s2 }
 0x22d   :  { %411 = vrot.lane.b32.xlu1 %v2371_v11, %s2250_s2 }
 0x231   :  { %491 = vrot.lane.b32.xlu1 %v2368_v10, %s2251_s24 }
 0x235   :  { %569 = vrot.lane.b32.xlu1 %v2371_v11, %s2251_s24  ;;  %s2261_s24 = smov 24  }
 0x29d   :  { %v315_v22 = vpop.xlane.xlu1 %314 }
 0x29e   :  { %v319_v23 = vsub.f32 %v231_v16, %v315_v22 }
 0x2a0   :  { %v321_v24 = vmul.f32 1.442695, %v319_v23 }
 0x2a1   :  { %v318_v25 = vpop.xlane.xlu1 %317 }
 0x2a2   :  { %2160 = vpow2.f32 %v321_v24  ;;  %v320_v26 = vsub.f32 %v309_v19, %v318_v25 }
 0x2a4   :  { %v323_v27 = vmul.f32 1.442695, %v320_v26 }
 0x2a5   :  { %v336_v28 = vpop.permute.xlu1 %335 }
 0x2a6   :  { %2162 = vpow2.f32 %v323_v27  ;;  %2031 = vmatpush3.msra.mxu0 %v336_v28 }
 0x2a7   :  { %2040 = vmatprep.subr.mxu0 %v2247_v6 }
 0x2a9   :  { %v412_v29 = vpop.permute.xlu1 %411 }
 0x2aa   :  { %2036 = vmatpush3.msra.mxu1 %v412_v29 }
 0x2ab   :  { %2045 = vmatprep.subr.mxu1 %v2247_v6 }
 0x2ad   :  { %v492_v34 = vpop.permute.xlu1 %491 }
 0x2af   :  { %v2161_v30 = vpop.eup %2160 }
 0x2b0   :  { %v325_v31 = vsel %vm159_vm2, %v2161_v30, 0.0 }
 0x2b1   :  { %326 = vadd.xlane.f32.xlu0 %v325_v31  ;;  %v570_v35 = vpop.permute.xlu1 %569 }
 0x2b3   :  { %v2163_v32 = vpop.eup %2162 }
 0x2b4   :  { %v328_v33 = vsel %vm159_vm2, %v2163_v32, 0.0 }
 0x2b5   :  { %329 = vadd.xlane.f32.xlu1 %v328_v33 }
 0x2c6   :  { %567 = vrot.lane.b32.xlu1 %v2385_v15, %s2252_s25 }
 0x2c7   :  { %489 = vrot.lane.b32.xlu0 %v2377_v13, %s2252_s25 }
 0x33a   :  { %v327_v36 = vpop.xlane.xlu0 %326 }
 0x33b   :  { %2164 = vrcp.f32 %v327_v36 }
 0x33e   :  { %v330_v37 = vpop.xlane.xlu1 %329  ;;  %v490_v42 = vpop.permute.xlu0 %489 }
 0x33f   :  { %2166 = vrcp.f32 %v330_v37 }
 0x342   :  { %v568_v43 = vpop.permute.xlu1 %567 }
 0x348   :  { %v2165_v38 = vpop.eup %2164 }
 0x349   :  { %v333_v39 = vmul.f32 %v2165_v38, %v2161_v30 }
 0x34b   :  { %2033 = vmatmul.mubr.msk.f32.vlgmr.msra.gmra.mxu0 %vm159_vm2, %v333_v39 }
 0x34c   :  { %v2167_v40 = vpop.eup %2166  ;;  %2041 = vmatpush3.xpose.msk.msra.mxu0 %vm159_vm2, %v492_v34  ;;  %2042 = vmatprep.mubr.msk.f32.mxu0 %vm2248_vm1, %v2247_v6 }
 0x34d   :  { %v334_v41 = vmul.f32 %v2167_v40, %v2163_v32  ;;  %2050 = vmatprep.subr.mxu0 %v2247_v6 }
 0x34f   :  { %2038 = vmatmul.mubr.msk.f32.vlgmr.msra.gmra.mxu1 %vm159_vm2, %v334_v41  ;;  %2043 = vmatmul.mubr.msk.f32.vlgmr.msra.gmra.mxu0 %vm159_vm2, %v490_v42 }
 0x350   :  { %2046 = vmatpush3.xpose.msk.msra.mxu1 %vm159_vm2, %v570_v35  ;;  %2047 = vmatprep.mubr.msk.f32.mxu1 %vm2248_vm1, %v2247_v6 }
 0x351   :  { %2055 = vmatprep.subr.mxu1 %v2247_v6  ;;  %2052 = vmatprep.mubr.msk.f32.mxu0 %vm2248_vm1, %v2247_v6 }
 0x353   :  { %2048 = vmatmul.mubr.msk.f32.vlgmr.msra.gmra.mxu1 %vm159_vm2, %v568_v43 }
 0x354   :  { %2057 = vmatprep.mubr.msk.f32.mxu1 %vm2248_vm1, %v2247_v6 }
 0x40b   :  { %v407_v44 = vpop.f32.mrf.mxu0 }
 0x40c   :  { %487 = vst.msk [vmem:[#allocation2] sm:$0xff] %vm159_vm2, %v407_v44 }
 0x40d   :  { %v2034_v45 = vpop.f32.mrf.mxu0 }
 0x40f   :  { %v483_v46 = vpop.f32.mrf.mxu1  ;;  %v563_v47 = vpop.f32.mrf.mxu0 }
 0x410   :  { %488 = vst.msk [vmem:[#allocation2 + $0x8] sm:$0xff] %vm159_vm2, %v483_v46  ;;  %v645_v48 = vsel %vm159_vm2, %v563_v47, -inf }
 0x411   :  { %646 = vmax.xlane.f32.xlu1 %v645_v48  ;;  %v2039_v49 = vpop.f32.mrf.mxu1  ;;  %v2044_v50 = vpop.f32.mrf.mxu0 }
 0x413   :  { %v641_v51 = vpop.f32.mrf.mxu1 }
 0x414   :  { %v648_v52 = vsel %vm159_vm2, %v641_v51, -inf }
 0x415   :  { %649 = vmax.xlane.f32.xlu0 %v648_v52  ;;  %v2049_v53 = vpop.f32.mrf.mxu1 }
 0x422   :  { %667 = vrot.lane.b32.xlu1 %v2368_v10, %s2253_s26 }
 0x426   :  { %832 = vrot.lane.b32.xlu1 %v2368_v10, %s2254_s27 }
 0x42a   :  { %910 = vrot.lane.b32.xlu1 %v2371_v11, %s2254_s27 }
 0x42b   :  { %743 = vrot.lane.b32.xlu0 %v2371_v11, %s2253_s26 }
 0x42f   :  { %830 = vrot.lane.b32.xlu0 %v2377_v13, %s2255_s30 }
 0x49a   :  { %v647_v54 = vpop.xlane.xlu1 %646 }
 0x49b   :  { %v651_v55 = vsub.f32 %v563_v47, %v647_v54 }
 0x49d   :  { %v653_v56 = vmul.f32 1.442695, %v651_v55 }
 0x49e   :  { %v668_v57 = vpop.permute.xlu1 %667  ;;  %v650_v58 = vpop.xlane.xlu0 %649 }
 0x49f   :  { %2168 = vpow2.f32 %v653_v56  ;;  %v652_v59 = vsub.f32 %v641_v51, %v650_v58  ;;  %2051 = vmatpush3.msra.mxu0 %v668_v57 }
 0x4a0   :  { %2060 = vmatprep.subr.mxu0 %v2247_v6 }
 0x4a1   :  { %v655_v60 = vmul.f32 1.442695, %v652_v59 }
 0x4a2   :  { %v744_v61 = vpop.permute.xlu0 %743  ;;  %v833_v3 = vpop.permute.xlu1 %832 }
 0x4a3   :  { %2170 = vpow2.f32 %v655_v60  ;;  %2056 = vmatpush3.msra.mxu1 %v744_v61 }
 0x4a4   :  { %2065 = vmatprep.subr.mxu1 %v2247_v6 }
 0x4a6   :  { %v911_v4 = vpop.permute.xlu1 %910  ;;  %v831_v17 = vpop.permute.xlu0 %830 }
 0x4ac   :  { %v2169_v62 = vpop.eup %2168 }
 0x4ad   :  { %v657_v63 = vsel %vm159_vm2, %v2169_v62, 0.0 }
 0x4ae   :  { %658 = vadd.xlane.f32.xlu1 %v657_v63 }
 0x4b0   :  { %v2171_v0 = vpop.eup %2170 }
 0x4b1   :  { %v660_v1 = vsel %vm159_vm2, %v2171_v0, 0.0 }
 0x4b2   :  { %661 = vadd.xlane.f32.xlu1 %v660_v1 }
 0x4c3   :  { %908 = vrot.lane.b32.xlu1 %v2385_v15, %s2255_s30 }
 0x537   :  { %v659_v7 = vpop.xlane.xlu1 %658 }
 0x538   :  { %2172 = vrcp.f32 %v659_v7 }
 0x53b   :  { %v662_v8 = vpop.xlane.xlu1 %661 }
 0x53c   :  { %2174 = vrcp.f32 %v662_v8 }
 0x53f   :  { %v909_v18 = vpop.permute.xlu1 %908 }
 0x545   :  { %v2173_v9 = vpop.eup %2172 }
 0x546   :  { %v665_v12 = vmul.f32 %v2173_v9, %v2169_v62 }
 0x548   :  { %2053 = vmatmul.mubr.msk.f32.vlgmr.msra.gmra.mxu0 %vm159_vm2, %v665_v12 }
 0x549   :  { %v2175_v14 = vpop.eup %2174  ;;  %2061 = vmatpush3.xpose.msk.msra.mxu0 %vm159_vm2, %v833_v3  ;;  %2062 = vmatprep.mubr.msk.f32.mxu0 %vm2248_vm1, %v2247_v6 }
 0x54a   :  { %v666_v16 = vmul.f32 %v2175_v14, %v2171_v0  ;;  %2070 = vmatprep.subr.mxu0 %v2247_v6 }
 0x54c   :  { %2058 = vmatmul.mubr.msk.f32.vlgmr.msra.gmra.mxu1 %vm159_vm2, %v666_v16  ;;  %2063 = vmatmul.mubr.msk.f32.vlgmr.msra.gmra.mxu0 %vm159_vm2, %v831_v17 }
 0x54d   :  { %2066 = vmatpush3.xpose.msk.msra.mxu1 %vm159_vm2, %v911_v4  ;;  %2067 = vmatprep.mubr.msk.f32.mxu1 %vm2248_vm1, %v2247_v6 }
 0x54e   :  { %2075 = vmatprep.subr.mxu1 %v2247_v6  ;;  %2072 = vmatprep.mubr.msk.f32.mxu0 %vm2248_vm1, %v2247_v6 }
 0x550   :  { %2068 = vmatmul.mubr.msk.f32.vlgmr.msra.gmra.mxu1 %vm159_vm2, %v909_v18 }
 0x551   :  { %2077 = vmatprep.mubr.msk.f32.mxu1 %vm2248_vm1, %v2247_v6 }
 0x608   :  { %v2450_v19 = vpop.f32.mrf.mxu0 }
 0x60a   :  { %v2054_v20 = vpop.f32.mrf.mxu0 }
 0x60c   :  { %v2452_v21 = vpop.f32.mrf.mxu1  ;;  %v904_v22 = vpop.f32.mrf.mxu0 }
 0x60d   :  { %v986_v23 = vsel %vm159_vm2, %v904_v22, -inf }
 0x60e   :  { %987 = vmax.xlane.f32.xlu0 %v986_v23  ;;  %v2059_v24 = vpop.f32.mrf.mxu1  ;;  %v2064_v25 = vpop.f32.mrf.mxu0  ;;  %v1515_v23 = vld [vmem:[%s2590_s3 + $0x8] sm:$0xff] }
 0x60f   :  { %v1514_v24 = vld [vmem:[%s2590_s3] sm:$0xff] }
 0x610   :  { %v982_v26 = vpop.f32.mrf.mxu1 }
 0x611   :  { %v989_v27 = vsel %vm159_vm2, %v982_v26, -inf }
 0x612   :  { %990 = vmax.xlane.f32.xlu1 %v989_v27  ;;  %v2069_v28 = vpop.f32.mrf.mxu1 }
 0x623   :  { %1008 = vrot.lane.b32.xlu1 %v2368_v10, %s2256_s14 }
 0x624   :  { %1084 = vrot.lane.b32.xlu0 %v2371_v11, %s2256_s14 }
 0x627   :  { %1173 = vrot.lane.b32.xlu1 %v2368_v10, %s2257_s15 }
 0x62b   :  { %1251 = vrot.lane.b32.xlu1 %v2371_v11, %s2257_s15 }
 0x62f   :  { %1249 = vrot.lane.b32.xlu1 %v2385_v15, %s2258_s16 }
 0x697   :  { %v988_v29 = vpop.xlane.xlu0 %987 }
 0x698   :  { %v992_v30 = vsub.f32 %v904_v22, %v988_v29  ;;  %v1516_v22 = vld [vmem:[%s2590_s3 + $0x10] sm:$0xff] }
 0x69a   :  { %v994_v31 = vmul.f32 1.442695, %v992_v30 }
 0x69b   :  { %v1085_v32 = vpop.permute.xlu0 %1084  ;;  %v991_v33 = vpop.xlane.xlu1 %990 }
 0x69c   :  { %2176 = vpow2.f32 %v994_v31  ;;  %v993_v34 = vsub.f32 %v982_v26, %v991_v33  ;;  %2076 = vmatpush3.msra.mxu1 %v1085_v32  ;;  %v1936_v33 = vld [vmem:[%s2591_s4] ss:$0 sm:$0xff] }
 0x69d   :  { %2085 = vmatprep.subr.mxu1 %v2247_v6 }
 0x69e   :  { %v996_v35 = vmul.f32 1.442695, %v993_v34 }
 0x69f   :  { %v1009_v36 = vpop.permute.xlu1 %1008 }
 0x6a0   :  { %2178 = vpow2.f32 %v996_v35  ;;  %2071 = vmatpush3.msra.mxu0 %v1009_v36 }
 0x6a1   :  { %2080 = vmatprep.subr.mxu0 %v2247_v6 }
 0x6a3   :  { %v1174_v42 = vpop.permute.xlu1 %1173 }
 0x6a7   :  { %v1252_v46 = vpop.permute.xlu1 %1251 }
 0x6a9   :  { %v2177_v37 = vpop.eup %2176 }
 0x6aa   :  { %v998_v38 = vsel %vm159_vm2, %v2177_v37, 0.0 }
 0x6ab   :  { %999 = vadd.xlane.f32.xlu0 %v998_v38  ;;  %v1250_v48 = vpop.permute.xlu1 %1249 }
 0x6ad   :  { %v2179_v15 = vpop.eup %2178 }
 0x6ae   :  { %v1001_v39 = vsel %vm159_vm2, %v2179_v15, 0.0 }
 0x6af   :  { %1002 = vadd.xlane.f32.xlu0 %v1001_v39 }
 0x6c5   :  { %1171 = vrot.lane.b32.xlu0 %v2377_v13, %s2258_s16 }
 0x734   :  { %v1000_v40 = vpop.xlane.xlu0 %999 }
 0x735   :  { %2180 = vrcp.f32 %v1000_v40 }
 0x738   :  { %v1003_v41 = vpop.xlane.xlu0 %1002 }
 0x739   :  { %2182 = vrcp.f32 %v1003_v41 }
 0x73c   :  { %v1172_v13 = vpop.permute.xlu0 %1171 }
 0x742   :  { %v2181_v43 = vpop.eup %2180 }
 0x743   :  { %v1006_v44 = vmul.f32 %v2181_v43, %v2177_v37 }
 0x745   :  { %2073 = vmatmul.mubr.msk.f32.vlgmr.msra.gmra.mxu0 %vm159_vm2, %v1006_v44 }
 0x746   :  { %v2183_v45 = vpop.eup %2182  ;;  %2081 = vmatpush3.xpose.msk.msra.mxu0 %vm159_vm2, %v1174_v42  ;;  %2082 = vmatprep.mubr.msk.f32.mxu0 %vm2248_vm1, %v2247_v6 }
 0x747   :  { %v1007_v47 = vmul.f32 %v2183_v45, %v2179_v15  ;;  %2090 = vmatprep.subr.mxu0 %v2247_v6 }
 0x749   :  { %2078 = vmatmul.mubr.msk.f32.vlgmr.msra.gmra.mxu1 %vm159_vm2, %v1007_v47  ;;  %2083 = vmatmul.mubr.msk.f32.vlgmr.msra.gmra.mxu0 %vm159_vm2, %v1172_v13 }
 0x74a   :  { %2086 = vmatpush3.xpose.msk.msra.mxu1 %vm159_vm2, %v1252_v46  ;;  %2087 = vmatprep.mubr.msk.f32.mxu1 %vm2248_vm1, %v2247_v6 }
 0x74b   :  { %2095 = vmatprep.subr.mxu1 %v2247_v6  ;;  %2092 = vmatprep.mubr.msk.f32.mxu0 %vm2248_vm1, %v2247_v6 }
 0x74d   :  { %2088 = vmatmul.mubr.msk.f32.vlgmr.msra.gmra.mxu1 %vm159_vm2, %v1250_v48 }
 0x74e   :  { %2097 = vmatprep.mubr.msk.f32.mxu1 %vm2248_vm1, %v2247_v6 }
 0x805   :  { %v1080_v49 = vpop.f32.mrf.mxu0 }
 0x807   :  { %v2074_v50 = vpop.f32.mrf.mxu0 }
 0x808   :  { %v1654_v50 = vld [vmem:[%s2592_s5 + $0x8] sm:$0xff] }
 0x809   :  { %v1156_v51 = vpop.f32.mrf.mxu1  ;;  %v1245_v52 = vpop.f32.mrf.mxu0 }
 0x80a   :  { %v1327_v53 = vsel %vm159_vm2, %v1245_v52, -inf }
 0x80b   :  { %1328 = vmax.xlane.f32.xlu0 %v1327_v53  ;;  %v2079_v54 = vpop.f32.mrf.mxu1  ;;  %v2084_v55 = vpop.f32.mrf.mxu0  ;;  %v1753_v53 = vld [vmem:[%s2594_s7 + $0x30] sm:$0xff] }
 0x80c   :  { %v1752_v54 = vld [vmem:[%s2594_s7 + $0x28] sm:$0xff]  ;;  %v1751_v55 = vld [vmem:[%s2594_s7 + $0x20] sm:$0xff] }
 0x80d   :  { %v1323_v56 = vpop.f32.mrf.mxu1 }
 0x80e   :  { %v1330_v57 = vsel %vm159_vm2, %v1323_v56, -inf }
 0x80f   :  { %1331 = vmax.xlane.f32.xlu1 %v1330_v57  ;;  %v2089_v58 = vpop.f32.mrf.mxu1 }
 0x820   :  { %1349 = vrot.lane.b32.xlu1 %v2368_v10, %s2259_s17 }
 0x824   :  { %821 = vrot.lane.b32.xlu1 %v2450_v19, %s2246_s29 }
 0x828   :  { %823 = vrot.lane.b32.xlu1 %v2452_v21, %s2246_s29 }
 0x82c   :  { %1164 = vrot.lane.b32.xlu1 %v1156_v51, %s2260_s18  ;;  %v1653_v51 = vld [vmem:[%s2592_s5] sm:$0xff] }
 0x894   :  { %v1329_v6 = vpop.xlane.xlu0 %1328 }
 0x895   :  { %v1333_v59 = vsub.f32 %v1245_v52, %v1329_v6  ;;  %v1754_v52 = vld [vmem:[%s2594_s7 + $0x38] sm:$0xff] }
 0x897   :  { %v1335_v60 = vmul.f32 1.442695, %v1333_v59 }
 0x898   :  { %v1332_v61 = vpop.xlane.xlu1 %1331 }
 0x899   :  { %2184 = vpow2.f32 %v1335_v60  ;;  %v1334_v62 = vsub.f32 %v1323_v56, %v1332_v61 }
 0x89b   :  { %v1337_v63 = vmul.f32 1.442695, %v1334_v62  ;;  %v1939_v62 = vld [vmem:[%s2596_s9] ss:$0 sm:$0xff] }
 0x89c   :  { %v1350_v0 = vpop.permute.xlu1 %1349 }
 0x89d   :  { %2186 = vpow2.f32 %v1337_v63  ;;  %2091 = vmatpush3.msra.mxu0 %v1350_v0  ;;  %v1940_v0 = vld [vmem:[%s2597_s10] ss:$0 sm:$0xff] }
 0x8a0   :  { %v822_v10 = vpop.permute.xlu1 %821 }
 0x8a1   :  { %828 = vst.msk [vmem:[#allocation2] sm:$0xff] %vm827_vm3, %v822_v10 }
 0x8a4   :  { %v824_v1 = vpop.permute.xlu1 %823 }
 0x8a5   :  { %829 = vst.msk [vmem:[#allocation2 + $0x8] sm:$0xff] %vm827_vm3, %v824_v1 }
 0x8a6   :  { %v2185_v3 = vpop.eup %2184 }
 0x8a7   :  { %v1339_v4 = vsel %vm159_vm2, %v2185_v3, 0.0 }
 0x8a8   :  { %1340 = vadd.xlane.f32.xlu0 %v1339_v4  ;;  %v1165_v7 = vpop.permute.xlu1 %1164 }
 0x8a9   :  { %1170 = vst.msk [vmem:[#allocation2 + $0x8] sm:$0xff] %vm1168_vm4, %v1165_v7 }
 0x8aa   :  { %v2187_v8 = vpop.eup %2186 }
 0x8ab   :  { %v1342_v9 = vsel %vm159_vm2, %v2187_v8, 0.0 }
 0x8ac   :  { %1343 = vadd.xlane.f32.xlu0 %v1342_v9  ;;  %v1750_v9 = vld [vmem:[%s2594_s7 + $0x18] sm:$0xff] }
 0x8c2   :  { %1425 = vrot.lane.b32.xlu0 %v2371_v11, %s2259_s17  ;;  %v1517_v11 = vld [vmem:[%s2590_s3 + $0x18] sm:$0xff] }
 0x8c3   :  { %2100 = vmatprep.subr.mxu0 %v1517_v11 }
 0x8c6   :  { %1162 = vrot.lane.b32.xlu0 %v1080_v49, %s2260_s18  ;;  %v1655_v49 = vld [vmem:[%s2592_s5 + $0x10] sm:$0xff] }
 0x931   :  { %v1341_v12 = vpop.xlane.xlu0 %1340 }
 0x932   :  { %2188 = vrcp.f32 %v1341_v12  ;;  %v1749_v12 = vld [vmem:[%s2594_s7 + $0x10] sm:$0xff] }
 0x935   :  { %v1344_v14 = vpop.xlane.xlu0 %1343 }
 0x936   :  { %2190 = vrcp.f32 %v1344_v14  ;;  %v1748_v14 = vld [vmem:[%s2594_s7 + $0x8] sm:$0xff] }
 0x939   :  { %v1426_v16 = vpop.permute.xlu0 %1425 }
 0x93a   :  { %2096 = vmatpush3.msra.mxu1 %v1426_v16  ;;  %v1747_v16 = vld [vmem:[%s2594_s7] sm:$0xff] }
 0x93d   :  { %v1163_v17 = vpop.permute.xlu0 %1162 }
 0x93e   :  { %1169 = vst.msk [vmem:[#allocation2] sm:$0xff] %vm1168_vm4, %v1163_v17  ;;  %v1941_v17 = vld [vmem:[%s2593_s6] ss:$0 sm:$0xff] }
 0x93f   :  { %v2189_v18 = vpop.eup %2188 }
 0x940   :  { %v1347_v19 = vmul.f32 %v2189_v18, %v2185_v3 }
 0x942   :  { %2093 = vmatmul.mubr.msk.f32.vlgmr.msra.gmra.mxu0 %vm159_vm2, %v1347_v19 }
 0x943   :  { %v2191_v20 = vpop.eup %2190  ;;  %2101 = vmatpush3.msra.mxu0 %v1517_v11 }
 0x944   :  { %v1348_v21 = vmul.f32 %v2191_v20, %v2187_v8  ;;  %2102 = vmatprep.subr.mxu0 %v1516_v22 }
 0x945   :  { %2103 = vmatpush3.msra.mxu0 %v1516_v22 }
 0x946   :  { %2098 = vmatmul.mubr.msk.f32.vlgmr.msra.gmra.mxu1 %vm159_vm2, %v1348_v21  ;;  %2104 = vmatprep.subr.mxu0 %v1515_v23 }
 0x947   :  { %2105 = vmatpush3.msra.mxu0 %v1515_v23  ;;  %v1944_v23 = vld [vmem:[%s2595_s8] ss:$0 sm:$0xff] }
 0x948   :  { %2106 = vmatprep.subr.mxu0 %v1514_v24 }
 0x949   :  { %2107 = vmatpush3.msra.mxu0 %v1514_v24 }
 0x94a   :  { %2122 = vmatprep.subr.mxu0 %v1754_v52 }
 0xa02   :  { %v1421_v25 = vpop.f32.mrf.mxu0 }
 0xa03   :  { %1503 = vrot.lane.b32.xlu0 %v1421_v25, %s2261_s24 }
 0xa04   :  { %v2094_v26 = vpop.f32.mrf.mxu0 }
 0xa06   :  { %v1497_v27 = vpop.f32.mrf.mxu1 }
 0xa07   :  { %1505 = vrot.lane.b32.xlu1 %v1497_v27, %s2261_s24 }
 0xa08   :  { %v2099_v28 = vpop.f32.mrf.mxu1 }
 0xa75   :  { %v1504_v29 = vpop.permute.xlu0 %1503 }
 0xa76   :  { %1510 = vst.msk [vmem:[#allocation2] sm:$0xff] %vm1509_vm5, %v1504_v29 }
 0xa79   :  { %v1506_v30 = vpop.permute.xlu1 %1505 }
 0xa7a   :  { %1511 = vst.msk [vmem:[#allocation2 + $0x8] sm:$0xff] %vm1509_vm5, %v1506_v30 }
 0xa7d   :  { %v1512_v31 = vld [vmem:[#allocation2] sm:$0xff] }
 0xa7e   :  { %2108 = vmatprep.mubr.msk.f32.mxu0 %vm72_vm0, %v1512_v31 }
 0xa81   :  { %v1513_v32 = vld [vmem:[#allocation2 + $0x8] sm:$0xff] }
 0xa82   :  { %2109 = vmatmul.mubr.msk.f32.vlgmr.msra.gmra.mxu0 %vm72_vm0, %v1513_v32 }
 0xa83   :  { %2123 = vmatpush3.msra.mxu0 %v1754_v52 }
 0xa84   :  { %2124 = vmatprep.subr.mxu0 %v1753_v53 }
 0xa85   :  { %2125 = vmatpush3.msra.mxu0 %v1753_v53 }
 0xa86   :  { %2126 = vmatprep.subr.mxu0 %v1752_v54 }
 0xa87   :  { %2127 = vmatpush3.msra.mxu0 %v1752_v54 }
 0xa88   :  { %2128 = vmatprep.subr.mxu0 %v1751_v55 }
 0xa89   :  { %2129 = vmatpush3.msra.mxu0 %v1751_v55 }
 0xa8a   :  { %2130 = vmatprep.subr.mxu0 %v1750_v9 }
 0xa8b   :  { %2131 = vmatpush3.msra.mxu0 %v1750_v9 }
 0xa8c   :  { %2132 = vmatprep.subr.mxu0 %v1749_v12 }
 0xa8d   :  { %2133 = vmatpush3.msra.mxu0 %v1749_v12 }
 0xa8e   :  { %2134 = vmatprep.subr.mxu0 %v1748_v14 }
 0xa8f   :  { %2135 = vmatpush3.msra.mxu0 %v1748_v14 }
 0xa90   :  { %2136 = vmatprep.subr.mxu0 %v1747_v16 }
 0xa91   :  { %2137 = vmatpush3.msra.mxu0 %v1747_v16 }
 0xb42   :  { %v2110_v34 = vpop.f32.mrf.mxu0 }
 0xb43   :  { %v1603_v35 = vadd.f32 %v2110_v34, %v1936_v33 }
 0xb44   :  { %v1597_v36 = vpop.f32.mrf.mxu0 }
 0xb45   :  { %v1598_v37 = vadd.f32 %v1936_v33, %v1597_v36  ;;  %v1607_v38 = vadd.f32 %v1603_v35, %v2355_v5 }
 0xb47   :  { %v1611_v15 = vsel %vm72_vm0, %v1607_v38, 0.0  ;;  %v1606_v39 = vadd.f32 %v1598_v37, %v2345_v2  ;;  %v1656_v2 = vld [vmem:[%s2592_s5 + $0x18] sm:$0xff] }
 0xb48   :  { %1612 = vadd.xlane.f32.xlu1 %v1611_v15  ;;  %2111 = vmatprep.subr.mxu1 %v1656_v2 }
 0xb49   :  { %v1608_v40 = vsel %vm72_vm0, %v1606_v39, 0.0  ;;  %2112 = vmatpush3.msra.mxu1 %v1656_v2  ;;  %v1948_v2 = vld [vmem:[%s2599_s12] ss:$0 sm:$0xff] }
 0xb4a   :  { %1609 = vadd.xlane.f32.xlu0 %v1608_v40  ;;  %2113 = vmatprep.subr.mxu1 %v1655_v49 }
 0xb4b   :  { %2114 = vmatpush3.msra.mxu1 %v1655_v49 }
 0xb4c   :  { %2115 = vmatprep.subr.mxu1 %v1654_v50 }
 0xb4d   :  { %2116 = vmatpush3.msra.mxu1 %v1654_v50 }
 0xb4e   :  { %2117 = vmatprep.subr.mxu1 %v1653_v51 }
 0xb4f   :  { %2118 = vmatpush3.msra.mxu1 %v1653_v51 }
 0xbd1   :  { %v1613_v41 = vpop.xlane.xlu1 %1612 }
 0xbd2   :  { %v1616_v42 = vmul.f32 0.03125, %v1613_v41 }
 0xbd3   :  { %v1610_v43 = vpop.xlane.xlu0 %1609 }
 0xbd4   :  { %v1615_v44 = vmul.f32 0.03125, %v1610_v43  ;;  %v1618_v45 = vsub.f32 %v1607_v38, %v1616_v42 }
 0xbd6   :  { %v1617_v46 = vsub.f32 %v1606_v39, %v1615_v44  ;;  %v1620_v48 = vmul.f32 %v1618_v45, %v1618_v45 }
 0xbd8   :  { %v1619_v47 = vmul.f32 %v1617_v46, %v1617_v46  ;;  %v1624_v5 = vsel %vm72_vm0, %v1620_v48, 0.0 }
 0xbda   :  { %v1621_v13 = vsel %vm72_vm0, %v1619_v47, 0.0 }
 0xbdb   :  { %1622 = vadd.xlane.f32.xlu0 %v1621_v13  ;;  %v1947_v13 = vld [vmem:[%s2598_s11] ss:$0 sm:$0xff] }
 0xbdf   :  { %1625 = vadd.xlane.f32.xlu0 %v1624_v5 }
 0xc64   :  { %v1623_v56 = vpop.xlane.xlu0 %1622 }
 0xc65   :  { %v1627_v57 = vmul.f32 0.03125, %v1623_v56 }
 0xc67   :  { %v1629_v58 = vadd.f32 1e-05, %v1627_v57 }
 0xc68   :  { %v1626_v6 = vpop.xlane.xlu0 %1625 }
 0xc69   :  { %2192 = vrsqrt.f32 %v1629_v58  ;;  %v1628_v59 = vmul.f32 0.03125, %v1626_v6 }
 0xc6b   :  { %v1630_v60 = vadd.f32 1e-05, %v1628_v59 }
 0xc6d   :  { %2194 = vrsqrt.f32 %v1630_v60 }
 0xc76   :  { %v2193_v61 = vpop.eup %2192 }
 0xc77   :  { %v1633_v63 = vmul.f32 %v2193_v61, %v1617_v46 }
 0xc79   :  { %v1642_v10 = vmul.f32 %v1939_v62, %v1633_v63 }
 0xc7a   :  { %v2195_v1 = vpop.eup %2194 }
 0xc7b   :  { %v1634_v3 = vmul.f32 %v2195_v1, %v1618_v45  ;;  %v1651_v4 = vadd.f32 %v1940_v0, %v1642_v10 }
 0xc7d   :  { %v1643_v7 = vmul.f32 %v1939_v62, %v1634_v3  ;;  %2119 = vmatprep.mubr.msk.f32.mxu1 %vm72_vm0, %v1651_v4 }
 0xc7f   :  { %v1652_v8 = vadd.f32 %v1940_v0, %v1643_v7 }
 0xc81   :  { %2120 = vmatmul.mubr.msk.f32.vlgmr.msra.gmra.mxu1 %vm72_vm0, %v1652_v8 }
 0xd41   :  { %v2121_v18 = vpop.f32.mrf.mxu1 }
 0xd42   :  { %v1742_v19 = vadd.f32 %v2121_v18, %v1941_v17 }
 0xd43   :  { %v1736_v20 = vpop.f32.mrf.mxu1 }
 0xd44   :  { %v1737_v21 = vadd.f32 %v1941_v17, %v1736_v20  ;;  %v1746_v22 = vmax.f32 %v1742_v19, 0.0 }
 0xd46   :  { %v1745_v11 = vmax.f32 %v1737_v21, 0.0 }
 0xd48   :  { %2138 = vmatprep.mubr.msk.f32.mxu0 %vm1762_vm6, %v1745_v11 }
 0xd49   :  { %2139 = vmatmul.mubr.msk.f32.vlgmr.msra.gmra.mxu0 %vm1762_vm6, %v1746_v22 }
 0xe09   :  { %v2140_v24 = vpop.f32.mrf.mxu0 }
 0xe0a   :  { %v1841_v25 = vadd.f32 %v2140_v24, %v1944_v23 }
 0xe0b   :  { %v1835_v26 = vpop.f32.mrf.mxu0 }
 0xe0c   :  { %v1836_v27 = vadd.f32 %v1944_v23, %v1835_v26  ;;  %v1845_v28 = vadd.f32 %v1841_v25, %v1652_v8 }
 0xe0e   :  { %v1849_v29 = vsel %vm72_vm0, %v1845_v28, 0.0  ;;  %v1844_v30 = vadd.f32 %v1836_v27, %v1651_v4 }
 0xe0f   :  { %1850 = vadd.xlane.f32.xlu0 %v1849_v29 }
 0xe10   :  { %v1846_v31 = vsel %vm72_vm0, %v1844_v30, 0.0 }
 0xe11   :  { %1847 = vadd.xlane.f32.xlu1 %v1846_v31 }
 0xe98   :  { %v1851_v32 = vpop.xlane.xlu0 %1850 }
 0xe99   :  { %v1853_v33 = vmul.f32 0.03125, %v1851_v32 }
 0xe9a   :  { %v1848_v34 = vpop.xlane.xlu1 %1847 }
 0xe9b   :  { %v1855_v35 = vsub.f32 %v1845_v28, %v1853_v33  ;;  %v1852_v36 = vmul.f32 0.03125, %v1848_v34 }
 0xe9d   :  { %v1854_v37 = vsub.f32 %v1844_v30, %v1852_v36  ;;  %v1857_v38 = vmul.f32 %v1855_v35, %v1855_v35 }
 0xe9f   :  { %v1861_v15 = vsel %vm72_vm0, %v1857_v38, 0.0  ;;  %v1856_v39 = vmul.f32 %v1854_v37, %v1854_v37 }
 0xea0   :  { %1862 = vadd.xlane.f32.xlu0 %v1861_v15 }
 0xea1   :  { %v1858_v40 = vsel %vm72_vm0, %v1856_v39, 0.0 }
 0xea2   :  { %1859 = vadd.xlane.f32.xlu1 %v1858_v40 }
 0xf29   :  { %v1863_v41 = vpop.xlane.xlu0 %1862 }
 0xf2a   :  { %v1865_v42 = vmul.f32 0.03125, %v1863_v41 }
 0xf2b   :  { %v1860_v43 = vpop.xlane.xlu1 %1859 }
 0xf2c   :  { %v1867_v44 = vadd.f32 1e-05, %v1865_v42  ;;  %v1864_v45 = vmul.f32 0.03125, %v1860_v43 }
 0xf2e   :  { %2196 = vrsqrt.f32 %v1867_v44  ;;  %v1866_v46 = vadd.f32 1e-05, %v1864_v45 }
 0xf30   :  { %2198 = vrsqrt.f32 %v1866_v46 }
 0xf3b   :  { %v2197_v47 = vpop.eup %2196 }
 0xf3c   :  { %v1871_v48 = vmul.f32 %v2197_v47, %v1855_v35 }
 0xf3d   :  { %v2199_v5 = vpop.eup %2198 }
 0xf3e   :  { %v1870_v49 = vmul.f32 %v2199_v5, %v1854_v37  ;;  %v1880_v50 = vmul.f32 %v1947_v13, %v1871_v48 }
 0xf40   :  { %v1879_v51 = vmul.f32 %v1947_v13, %v1870_v49  ;;  %v1889_v52 = vadd.f32 %v1948_v2, %v1880_v50 }
 0xf42   :  { %v1888_v53 = vadd.f32 %v1948_v2, %v1879_v51  ;;  %1891 = vst.msk [vmem:[#allocation6 + $0x8] sm:$0xff] %vm72_vm0, %v1889_v52 }
 0xf44   :  { %1890 = vst.msk [vmem:[#allocation6] sm:$0xff] %vm72_vm0, %v1888_v53 }
 0xf45   :  { %2231 = shalt.err (!%p2228_p9)
}
 0xf46   :  { %1903 = dma.vmem_to_hbm [thread:$0]  %s1898_s0, 256, %s2600_s13, [#allocation5], %s2245_s28, %s2245_s28, %s2246_s29  }
 0xf47   :  { %2242 = dma.done.wait [#allocation5], 256  }
 0xf48   :  { %2243 = vsyncadd [#allocation5], 4294967040 }
 0xf49   :  { %1907 = vsyncpa [#allocation4], 1 }
 0xf4a   :  { %1908 = vsyncpa [#allocation5], 1 }

</bundles_post_ra>
